<compile_context>
chip_gen: v5e
topology: v5e:2x2
jax: 0.10.0
libtpu: 0.0.40
codegen_flags: <defaults>
</compile_context>

<pallas_src>
import functools

import jax
import jax.numpy as jnp
from jax import lax
from jax.experimental import pallas as pl
from jax.experimental.pallas import tpu as pltpu


def _round_up(x, m):
    return ((x + m - 1) // m) * m


def _res_block_kernel(x2f_ref, xid_ref, w1_ref, w2_ref, o_ref, *, Wr, S, H, W, L1):
    """Fused conv3x3 -> relu -> conv3x3 -> +identity -> relu.

    x2f_ref : (Cp, L2)    input, zero-padded by 2 px, batch-folded flat raster (lanes)
    xid_ref : (Cp, Lo)    identity (input) in the output raster layout
    w1_ref  : (Cp, 9*Cp)  conv1 weights, K axis ordered (ki, kj, cin)
    w2_ref  : (Cp, 9*Cp)  conv2 weights
    o_ref   : (Cp, Lo)    output raster (Lo multiple of 128 -> lane-dense stores)
    """
    f32 = jnp.float32
    Lo = o_ref.shape[1]
    offs = tuple(ki * Wr + kj for ki in range(3) for kj in range(3))

    x = x2f_ref[...]                                                     # (Cp, L2)

    # ---- conv1: single K=9*Cp MXU contraction over the 9 shifted raster slabs ----
    lhs1 = jnp.concatenate([x[:, o:o + L1] for o in offs], axis=0)       # (9Cp, L1)
    y1 = jnp.dot(w1_ref[...], lhs1, preferred_element_type=f32)          # (Cp, L1)

    # ---- relu, then zero the 1-px ring / raster junk so it acts as conv2's padding --
    # Row/col decode of the flat raster index, done in f32 with a +0.5 bias so the
    # floors are exact no matter how the divide is lowered (no vector int div needed).
    q = lax.broadcasted_iota(jnp.int32, (1, L1), 1).astype(f32) + 0.5
    qb = q - jnp.floor(q / S) * S            # local index + 0.5, within one batch slab
    r = jnp.floor(qb / Wr)                   # raster row (exact integer-valued f32)
    c = qb - r * Wr - 0.5                    # raster col (exact integer-valued f32)
    valid = (r >= 1) & (r <= H) & (c >= 1) & (c <= W)
    y1 = jnp.where(valid, jnp.maximum(y1, 0.0), 0.0)

    # ---- conv2: second K=9*Cp contraction over the masked conv1 output ----
    lhs2 = jnp.concatenate([y1[:, o:o + Lo] for o in offs], axis=0)      # (9Cp, Lo)
    y2 = jnp.dot(w2_ref[...], lhs2, preferred_element_type=f32)          # (Cp, Lo)

    # ---- residual add + relu (lane-dense store) ----
    o_ref[...] = jnp.maximum(y2 + xid_ref[...], 0.0).astype(o_ref.dtype)


def basic_res_block(x, w1, w2):
    """x: (N, C, H, W) float32 (NCHW, like torch).  w1, w2: (Cout, Cin, 3, 3)."""
    N, C, H, W = x.shape
    Cout = w1.shape[0]
    assert w1.shape == (Cout, C, 3, 3) and w2.shape == (Cout, Cout, 3, 3)
    assert Cout == C, "downsample=None requires inplanes == planes"

    Cp = _round_up(C, 8)                    # channel rows padded to a sublane tile
    Wr = _round_up(W + 4, 8)                # raster row stride (input padded 2 each side)
    S = (H + 4) * Wr                        # per-batch-element raster stride
    Lo = _round_up(N * S, 128)              # output slab length (lanes, 128-aligned)
    L1 = _round_up(Lo + 2 * Wr + 2, 128)    # conv1 extended-output slab length
    L2 = _round_up(L1 + 2 * Wr + 2, 128)    # padded-input slab length

    # ---- glue: channels -> sublanes, batch-folded flat raster -> lanes ----
    xp = jnp.pad(x, ((0, 0), (0, Cp - C), (2, 2), (2, Wr - W - 2)))       # (N,Cp,H+4,Wr)
    x2f = jnp.transpose(xp, (1, 0, 2, 3)).reshape(Cp, N * S)
    x2f = jnp.pad(x2f, ((0, 0), (0, L2 - N * S))).astype(jnp.float32)     # (Cp, L2)

    xi = jnp.pad(x, ((0, 0), (0, Cp - C), (0, 4), (0, Wr - W)))           # (N,Cp,H+4,Wr)
    xid = jnp.transpose(xi, (1, 0, 2, 3)).reshape(Cp, N * S)
    xid = jnp.pad(xid, ((0, 0), (0, Lo - N * S))).astype(jnp.float32)     # (Cp, Lo)

    # Weights flattened to one (Cp, 9*Cp) matrix; K ordered (ki, kj, cin) to match the
    # kernel's tap-concat order.  (bf16 operands would be the next step at real C.)
    def _flatten_w(w):
        wp = jnp.pad(w, ((0, Cp - w.shape[0]), (0, Cp - w.shape[1]), (0, 0), (0, 0)))
        return jnp.transpose(wp, (0, 2, 3, 1)).reshape(Cp, 9 * Cp).astype(jnp.float32)

    wk1 = _flatten_w(w1)
    wk2 = _flatten_w(w2)

    kernel = functools.partial(_res_block_kernel, Wr=Wr, S=S, H=H, W=W, L1=L1)

    out_t = pl.pallas_call(
        kernel,
        out_shape=jax.ShapeDtypeStruct((Cp, Lo), x.dtype),
        in_specs=[
            pl.BlockSpec(memory_space=pltpu.MemorySpace.VMEM),
            pl.BlockSpec(memory_space=pltpu.MemorySpace.VMEM),
            pl.BlockSpec(memory_space=pltpu.MemorySpace.VMEM),
            pl.BlockSpec(memory_space=pltpu.MemorySpace.VMEM),
        ],
        out_specs=pl.BlockSpec(memory_space=pltpu.MemorySpace.VMEM),
        compiler_params=pltpu.CompilerParams(vmem_limit_bytes=32 * 1024 * 1024),
    )(x2f, xid, wk1, wk2)

    # ---- glue: back to NCHW ----
    out = out_t[:C, :N * S].reshape(C, N, H + 4, Wr)
    return jnp.transpose(out, (1, 0, 2, 3))[:, :, :H, :W]


def _reference(x, w1, w2):
    """Pure-JAX reference matching the PyTorch forward."""
    dn = ('NCHW', 'OIHW', 'NCHW')
    hi = lax.Precision.HIGHEST
    y = lax.conv_general_dilated(x, w1, (1, 1), ((1, 1), (1, 1)),
                                 dimension_numbers=dn, precision=hi)
    y = jnp.maximum(y, 0.0)
    y = lax.conv_general_dilated(y, w2, (1, 1), ((1, 1), (1, 1)),
                                 dimension_numbers=dn, precision=hi)
    return jnp.maximum(y + x, 0.0)


if __name__ == "__main__":
    key = jax.random.PRNGKey(0)
    k_x, k_w1, k_w2 = jax.random.split(key, 3)

    N, C, H, W = 2, 4, 16, 16           # inplanes == planes == 4
    x = jax.random.normal(k_x, (N, C, H, W), dtype=jnp.float32)
    # Deterministic synthetic weights (shapes from nn.Conv2d(C, C, 3, bias=False)).
    w1 = 0.2 * jax.random.normal(k_w1, (C, C, 3, 3), dtype=jnp.float32)
    w2 = 0.2 * jax.random.normal(k_w2, (C, C, 3, 3), dtype=jnp.float32)

    out = jax.jit(basic_res_block)(x, w1, w2)
    out = jax.block_until_ready(out)

    ref = _reference(x, w1, w2)
    assert out.shape == ref.shape == (N, C, H, W)
    assert jnp.allclose(out, ref, rtol=1e-3, atol=1e-3), (
        float(jnp.max(jnp.abs(out - ref))))

    print("KERNEL_OK")
</pallas_src>

<mosaic_0001>
module attributes {stable_mosaic.version = 11 : i64} {
  func.func @_res_block_kernel(%arg0: memref<8x1280xf32, #tpu.memory_space<vmem>>, %arg1: memref<8x1024xf32, #tpu.memory_space<vmem>>, %arg2: memref<8x72xf32, #tpu.memory_space<vmem>>, %arg3: memref<8x72xf32, #tpu.memory_space<vmem>>, %arg4: memref<8x1024xf32, #tpu.memory_space<vmem>>) attributes {dimension_semantics = [], scalar_prefetch = 0 : i64, scratch_operands = 0 : i64, tpu.core_type = #tpu.core_type<tc>} {
    %c0 = arith.constant 0 : index
    %c0_0 = arith.constant 0 : index
    %0 = vector.load %arg0[%c0, %c0_0] : memref<8x1280xf32, #tpu.memory_space<vmem>>, vector<8x1280xf32>
    %1 = vector.extract_strided_slice %0 {offsets = [0, 0], sizes = [8, 1152], strides = [1, 1]} : vector<8x1280xf32> to vector<8x1152xf32>
    %2 = vector.extract_strided_slice %0 {offsets = [0, 1], sizes = [8, 1152], strides = [1, 1]} : vector<8x1280xf32> to vector<8x1152xf32>
    %3 = vector.extract_strided_slice %0 {offsets = [0, 2], sizes = [8, 1152], strides = [1, 1]} : vector<8x1280xf32> to vector<8x1152xf32>
    %4 = vector.extract_strided_slice %0 {offsets = [0, 24], sizes = [8, 1152], strides = [1, 1]} : vector<8x1280xf32> to vector<8x1152xf32>
    %5 = vector.extract_strided_slice %0 {offsets = [0, 25], sizes = [8, 1152], strides = [1, 1]} : vector<8x1280xf32> to vector<8x1152xf32>
    %6 = vector.extract_strided_slice %0 {offsets = [0, 26], sizes = [8, 1152], strides = [1, 1]} : vector<8x1280xf32> to vector<8x1152xf32>
    %7 = vector.extract_strided_slice %0 {offsets = [0, 48], sizes = [8, 1152], strides = [1, 1]} : vector<8x1280xf32> to vector<8x1152xf32>
    %8 = vector.extract_strided_slice %0 {offsets = [0, 49], sizes = [8, 1152], strides = [1, 1]} : vector<8x1280xf32> to vector<8x1152xf32>
    %9 = vector.extract_strided_slice %0 {offsets = [0, 50], sizes = [8, 1152], strides = [1, 1]} : vector<8x1280xf32> to vector<8x1152xf32>
    %10 = tpu.concatenate %1, %2, %3, %4, %5, %6, %7, %8, %9 in 0 : vector<8x1152xf32>, vector<8x1152xf32>, vector<8x1152xf32>, vector<8x1152xf32>, vector<8x1152xf32>, vector<8x1152xf32>, vector<8x1152xf32>, vector<8x1152xf32>, vector<8x1152xf32> -> vector<72x1152xf32>
    %c0_1 = arith.constant 0 : index
    %c0_2 = arith.constant 0 : index
    %11 = vector.load %arg2[%c0_1, %c0_2] : memref<8x72xf32, #tpu.memory_space<vmem>>, vector<8x72xf32>
    %cst = arith.constant dense<0.000000e+00> : vector<8x1152xf32>
    %12 = tpu.matmul %11, %10, %cst {dimension_numbers = #tpu.dot_dimension_numbers<[1], [0], [0], [1], [0, 0, 1, 1], [], []>} : vector<8x72xf32>, vector<72x1152xf32>, vector<8x1152xf32> -> vector<8x1152xf32>
    %13 = tpu.iota {dimensions = array<i32: 1>} : vector<1x1152xi32>
    %14 = arith.sitofp %13 : vector<1x1152xi32> to vector<1x1152xf32>
    %cst_3 = arith.constant 5.000000e-01 : f32
    %15 = vector.broadcast %cst_3 : f32 to vector<1x1152xf32>
    %16 = arith.addf %14, %15 : vector<1x1152xf32>
    %cst_4 = arith.constant 4.800000e+02 : f32
    %17 = vector.broadcast %cst_4 : f32 to vector<1x1152xf32>
    %18 = arith.divf %16, %17 : vector<1x1152xf32>
    %19 = math.floor %18 : vector<1x1152xf32>
    %cst_5 = arith.constant 4.800000e+02 : f32
    %20 = vector.broadcast %cst_5 : f32 to vector<1x1152xf32>
    %21 = arith.mulf %19, %20 : vector<1x1152xf32>
    %22 = arith.subf %16, %21 : vector<1x1152xf32>
    %cst_6 = arith.constant 2.400000e+01 : f32
    %23 = vector.broadcast %cst_6 : f32 to vector<1x1152xf32>
    %24 = arith.divf %22, %23 : vector<1x1152xf32>
    %25 = math.floor %24 : vector<1x1152xf32>
    %cst_7 = arith.constant 2.400000e+01 : f32
    %26 = vector.broadcast %cst_7 : f32 to vector<1x1152xf32>
    %27 = arith.mulf %25, %26 : vector<1x1152xf32>
    %28 = arith.subf %22, %27 : vector<1x1152xf32>
    %cst_8 = arith.constant 5.000000e-01 : f32
    %29 = vector.broadcast %cst_8 : f32 to vector<1x1152xf32>
    %30 = arith.subf %28, %29 : vector<1x1152xf32>
    %cst_9 = arith.constant 1.000000e+00 : f32
    %31 = vector.broadcast %cst_9 : f32 to vector<1x1152xf32>
    %32 = arith.cmpf oge, %25, %31 : vector<1x1152xf32>
    %cst_10 = arith.constant 1.600000e+01 : f32
    %33 = vector.broadcast %cst_10 : f32 to vector<1x1152xf32>
    %34 = arith.cmpf ole, %25, %33 : vector<1x1152xf32>
    %35 = arith.andi %32, %34 : vector<1x1152xi1>
    %cst_11 = arith.constant 1.000000e+00 : f32
    %36 = vector.broadcast %cst_11 : f32 to vector<1x1152xf32>
    %37 = arith.cmpf oge, %30, %36 : vector<1x1152xf32>
    %38 = arith.andi %35, %37 : vector<1x1152xi1>
    %cst_12 = arith.constant 1.600000e+01 : f32
    %39 = vector.broadcast %cst_12 : f32 to vector<1x1152xf32>
    %40 = arith.cmpf ole, %30, %39 : vector<1x1152xf32>
    %41 = arith.andi %38, %40 : vector<1x1152xi1>
    %cst_13 = arith.constant 0.000000e+00 : f32
    %42 = vector.broadcast %cst_13 : f32 to vector<8x1152xf32>
    %43 = arith.maximumf %12, %42 : vector<8x1152xf32>
    %cst_14 = arith.constant 0.000000e+00 : f32
    %44 = vector.shape_cast %41 : vector<1x1152xi1> to vector<1x1152xi1>
    %45 = vector.broadcast %44 : vector<1x1152xi1> to vector<8x1152xi1>
    %46 = vector.broadcast %cst_14 : f32 to vector<8x1152xf32>
    %47 = arith.select %45, %43, %46 : vector<8x1152xi1>, vector<8x1152xf32>
    %48 = vector.extract_strided_slice %47 {offsets = [0, 0], sizes = [8, 1024], strides = [1, 1]} : vector<8x1152xf32> to vector<8x1024xf32>
    %49 = vector.extract_strided_slice %47 {offsets = [0, 1], sizes = [8, 1024], strides = [1, 1]} : vector<8x1152xf32> to vector<8x1024xf32>
    %50 = vector.extract_strided_slice %47 {offsets = [0, 2], sizes = [8, 1024], strides = [1, 1]} : vector<8x1152xf32> to vector<8x1024xf32>
    %51 = vector.extract_strided_slice %47 {offsets = [0, 24], sizes = [8, 1024], strides = [1, 1]} : vector<8x1152xf32> to vector<8x1024xf32>
    %52 = vector.extract_strided_slice %47 {offsets = [0, 25], sizes = [8, 1024], strides = [1, 1]} : vector<8x1152xf32> to vector<8x1024xf32>
    %53 = vector.extract_strided_slice %47 {offsets = [0, 26], sizes = [8, 1024], strides = [1, 1]} : vector<8x1152xf32> to vector<8x1024xf32>
    %54 = vector.extract_strided_slice %47 {offsets = [0, 48], sizes = [8, 1024], strides = [1, 1]} : vector<8x1152xf32> to vector<8x1024xf32>
    %55 = vector.extract_strided_slice %47 {offsets = [0, 49], sizes = [8, 1024], strides = [1, 1]} : vector<8x1152xf32> to vector<8x1024xf32>
    %56 = vector.extract_strided_slice %47 {offsets = [0, 50], sizes = [8, 1024], strides = [1, 1]} : vector<8x1152xf32> to vector<8x1024xf32>
    %57 = tpu.concatenate %48, %49, %50, %51, %52, %53, %54, %55, %56 in 0 : vector<8x1024xf32>, vector<8x1024xf32>, vector<8x1024xf32>, vector<8x1024xf32>, vector<8x1024xf32>, vector<8x1024xf32>, vector<8x1024xf32>, vector<8x1024xf32>, vector<8x1024xf32> -> vector<72x1024xf32>
    %c0_15 = arith.constant 0 : index
    %c0_16 = arith.constant 0 : index
    %58 = vector.load %arg3[%c0_15, %c0_16] : memref<8x72xf32, #tpu.memory_space<vmem>>, vector<8x72xf32>
    %cst_17 = arith.constant dense<0.000000e+00> : vector<8x1024xf32>
    %59 = tpu.matmul %58, %57, %cst_17 {dimension_numbers = #tpu.dot_dimension_numbers<[1], [0], [0], [1], [0, 0, 1, 1], [], []>} : vector<8x72xf32>, vector<72x1024xf32>, vector<8x1024xf32> -> vector<8x1024xf32>
    %c0_18 = arith.constant 0 : index
    %c0_19 = arith.constant 0 : index
    %60 = vector.load %arg1[%c0_18, %c0_19] : memref<8x1024xf32, #tpu.memory_space<vmem>>, vector<8x1024xf32>
    %61 = arith.addf %59, %60 : vector<8x1024xf32>
    %cst_20 = arith.constant 0.000000e+00 : f32
    %62 = vector.broadcast %cst_20 : f32 to vector<8x1024xf32>
    %63 = arith.maximumf %61, %62 : vector<8x1024xf32>
    %c0_21 = arith.constant 0 : index
    %c0_22 = arith.constant 0 : index
    %64 = vector.load %arg4[%c0_21, %c0_22] : memref<8x1024xf32, #tpu.memory_space<vmem>>, vector<8x1024xf32>
    tpu.vector_store %arg4[%c0_21, %c0_22], %63 {strides = array<i32>} : memref<8x1024xf32, #tpu.memory_space<vmem>>, vector<8x1024xf32>,
    return
  }
}

</mosaic_0001>

<bundles_post_ra>
// kernel: basic_res_block.1
= control target key start
LH: loop header
LB: loop body
LE: loop exit
PB: predicated region body
PF: predicated region fallthrough
CT: control target
= control target key end

     0   :  { %s1637_s27 = smov 127   ;;  %s1638_s10 = smov 126   ;;  %vm2668_vm0 = vcmask 637952   ;;  %vm2661_vm1 = vcmask 1039360   ;;  %vm2662_vm2 = vcmask 1031168   ;;  %vm2667_vm3 = vcmask 646144   ;;  %s2644_s0 = inlined_call_operand.vmem [shape: f32[8,1280], index: 0, kind: input, shape index: {}]   ;;  %s2645_s2 = inlined_call_operand.vmem [shape: f32[8,72], index: 2, kind: input, shape index: {}]   ;;  %s2646_s3 = inlined_call_operand.vmem [shape: f32[8,72], index: 3, kind: input, shape index: {}]   ;;  %s2647_s1 = inlined_call_operand.vmem [shape: f32[8,1024], index: 1, kind: input, shape index: {}]   ;;  %s2648_s4 = inlined_call_operand.vmem [shape: f32[8,1024], index: 4, kind: output, shape index: {}]  }
   0x1   :  { %v1675_v0 = vld [vmem:[%s2644_s0 + $0x40] sm:$0xff]  ;;  %v26_v1 = vld [vmem:[%s2644_s0 + $0x48] sm:$0xff]  ;;  %v1711_v9 = vld [vmem:[%s2644_s0 + $0x30] sm:$0xff]  ;;  %s1640_s11 = smov 104   ;;  %s1641_s12 = smov 79   ;;  %vm2666_vm4 = vcmask 654336  }
   0x2   :  { %v1683_v2 = vld [vmem:[%s2644_s0 + $0x20] sm:$0xff]  ;;  %v1293_v3 = vpack.i.bf16 %v26_v1, %v1675_v0  ;;  %v1689_v4 = vld [vmem:[%s2644_s0 + $0x28] sm:$0xff]  ;;  %v1716_v10 = vld [vmem:[%s2644_s0 + $0x38] sm:$0xff]  ;;  %s1642_s13 = smov 80   ;;  %s1643_s14 = smov 102   ;;  %vm2665_vm5 = vcmask 834560  }
   0x3   :  { %v1694_v5 = vld [vmem:[%s2644_s0] sm:$0xff]  ;;  %v1699_v6 = vld [vmem:[%s2644_s0 + $0x8] sm:$0xff]  ;;  %v1283_v7 = vpack.i.bf16 %v1689_v4, %v1683_v2  ;;  %v1721_v11 = vld [vmem:[%s2644_s0 + $0x10] sm:$0xff]  ;;  %v1288_v13 = vpack.i.bf16 %v1716_v10, %v1711_v9  ;;  %s1644_s15 = smov 103   ;;  %v1398_v19 = vpack.i.bf16 %v1675_v0, %v1716_v10  ;;  %v1428_v20 = vpack.i.bf16 %v26_v1, %v1689_v4 }
   0x4   :  { %v1273_v8 = vpack.i.bf16 %v1699_v6, %v1694_v5  ;;  %1294 = vrot.lane.b32.xlu2 %v1293_v3, %s1637_s27  ;;  %v1726_v12 = vld [vmem:[%s2644_s0 + $0x18] sm:$0xff]  ;;  %v1323_v15 = vpack.i.bf16 %v1721_v11, %v1694_v5  ;;  %s1639_s0 = smov 78   ;;  %v1343_v16 = vpack.i.bf16 %v1694_v5, %v1683_v2  ;;  %v1348_v17 = vpack.i.bf16 %v1711_v9, %v1699_v6 }
   0x5   :  { %1284 = vrot.lane.b32.xlu1 %v1283_v7, %s1637_s27  ;;  %v1278_v14 = vpack.i.bf16 %v1726_v12, %v1721_v11  ;;  %v1403_v18 = vpack.i.bf16 %v1683_v2, %v1726_v12  ;;  %vm2664_vm6 = vcmask 842752   ;;  %vm2663_vm7 = vcmask 850944  }
   0x6   :  { %1274 = vrot.lane.b32.xlu0 %v1273_v8, %s1637_s27  ;;  %vm2660_vm8 = vcmask 588800  }
   0xc   :  { %1299 = vrot.lane.b32.xlu2 %v1273_v8, %s1638_s10 }
   0xd   :  { %1289 = vrot.lane.b32.xlu1 %v1288_v13, %s1637_s27 }
   0xe   :  { %1279 = vrot.lane.b32.xlu0 %v1278_v14, %s1637_s27 }
  0x14   :  { %1314 = vrot.lane.b32.xlu2 %v1288_v13, %s1638_s10 }
  0x15   :  { %1309 = vrot.lane.b32.xlu1 %v1283_v7, %s1638_s10 }
  0x16   :  { %1304 = vrot.lane.b32.xlu0 %v1278_v14, %s1638_s10 }
  0x1c   :  { %1329 = vrot.lane.b32.xlu2 %v1278_v14, %s1639_s0 }
  0x1d   :  { %1324 = vrot.lane.b32.xlu1 %v1323_v15, %s1640_s11 }
  0x1e   :  { %1319 = vrot.lane.b32.xlu0 %v1293_v3, %s1638_s10 }
  0x24   :  { %1344 = vrot.lane.b32.xlu2 %v1343_v16, %s1641_s12 }
  0x25   :  { %1339 = vrot.lane.b32.xlu1 %v1278_v14, %s1641_s12 }
  0x26   :  { %1334 = vrot.lane.b32.xlu0 %v1343_v16, %s1639_s0 }
  0x2c   :  { %1359 = vrot.lane.b32.xlu2 %v1343_v16, %s1642_s13 }
  0x2d   :  { %1354 = vrot.lane.b32.xlu1 %v1278_v14, %s1642_s13 }
  0x2e   :  { %1349 = vrot.lane.b32.xlu0 %v1348_v17, %s1639_s0 }
  0x34   :  { %1374 = vrot.lane.b32.xlu2 %v1343_v16, %s1643_s14 }
  0x35   :  { %1369 = vrot.lane.b32.xlu1 %v1278_v14, %s1643_s14 }
  0x36   :  { %1364 = vrot.lane.b32.xlu0 %v1348_v17, %s1641_s12 }
  0x3c   :  { %1389 = vrot.lane.b32.xlu2 %v1343_v16, %s1644_s15 }
  0x3d   :  { %1384 = vrot.lane.b32.xlu1 %v1278_v14, %s1644_s15 }
  0x3e   :  { %1379 = vrot.lane.b32.xlu0 %v1348_v17, %s1642_s13 }
  0x44   :  { %1404 = vrot.lane.b32.xlu2 %v1403_v18, %s1640_s11 }
  0x45   :  { %1399 = vrot.lane.b32.xlu1 %v1398_v19, %s1639_s0 }
  0x46   :  { %1394 = vrot.lane.b32.xlu0 %v1348_v17, %s1643_s14 }
  0x4c   :  { %1419 = vrot.lane.b32.xlu2 %v1348_v17, %s1640_s11 }
  0x4d   :  { %1414 = vrot.lane.b32.xlu1 %v1398_v19, %s1641_s12 }
  0x4e   :  { %1409 = vrot.lane.b32.xlu0 %v1348_v17, %s1644_s15 }
  0x54   :  { %1434 = vrot.lane.b32.xlu2 %v1398_v19, %s1643_s14 }
  0x55   :  { %1429 = vrot.lane.b32.xlu1 %v1428_v20, %s1639_s0 }
  0x56   :  { %1424 = vrot.lane.b32.xlu0 %v1398_v19, %s1642_s13 }
  0x5c   :  { %1449 = vrot.lane.b32.xlu2 %v1428_v20, %s1642_s13 }
  0x5d   :  { %1444 = vrot.lane.b32.xlu1 %v1398_v19, %s1644_s15 }
  0x5e   :  { %1439 = vrot.lane.b32.xlu0 %v1428_v20, %s1641_s12  ;;  %v1776_v21 = vpop.permute.xlu2 %1294 }
  0x5f   :  { %v2649_v35 = vunpack.i.l.bf16 %v1776_v21 }
  0x64   :  { %1464 = vrot.lane.b32.xlu2 %v1428_v20, %s1644_s15 }
  0x65   :  { %1459 = vrot.lane.b32.xlu1 %v1428_v20, %s1643_s14 }
  0x66   :  { %1454 = vrot.lane.b32.xlu0 %v1398_v19, %s1640_s11  ;;  %v1781_v22 = vpop.permute.xlu2 %1299 }
  0x6e   :  { %1469 = vrot.lane.b32.xlu0 %v1428_v20, %s1640_s11  ;;  %v1784_v23 = vpop.permute.xlu2 %1314 }
  0x6f   :  { %v2659_v39 = vunpack.i.l.bf16 %v1784_v23  ;;  %v1317_v47 = vunpack.i.h.bf16 %v1784_v23 }
  0x76   :  { %v1330_v24 = vpop.permute.xlu2 %1329 }
  0x77   :  { %v1786_v25 = vpop.permute.xlu1 %1284  ;;  %v1332_v26 = vunpack.i.h.bf16 %v1330_v24  ;;  %v1331_v27 = vunpack.i.l.bf16 %v1330_v24 }
  0x78   :  { %v1788_v28 = vpop.permute.xlu0 %1274  ;;  %v2651_v30 = vunpack.i.h.bf16 %v1786_v25 }
  0x79   :  { %v333_v29 = vsel %vm2668_vm0, %v1331_v27, %v1332_v26 }
  0x7a   :  { %401 = vmatpush.msra.mxu2 %v333_v29 }
  0x7e   :  { %v1813_v38 = vpop.permute.xlu2 %1344 }
  0x7f   :  { %v1792_v31 = vpop.permute.xlu1 %1289  ;;  %v1346_v50 = vunpack.i.l.bf16 %v1813_v38  ;;  %v1347_v20 = vunpack.i.h.bf16 %v1813_v38 }
  0x80   :  { %v1794_v32 = vpop.permute.xlu0 %1279  ;;  %v2658_v33 = vunpack.i.h.bf16 %v1792_v31  ;;  %v2655_v34 = vunpack.i.l.bf16 %v1792_v31 }
  0x82   :  { %v1804_v36 = vsel %vm2661_vm1, %v2658_v33, %v2649_v35  ;;  %v1811_v37 = vsel %vm2661_vm1, %v2651_v30, %v2655_v34 }
  0x86   :  { %v1828_v44 = vpop.permute.xlu2 %1359 }
  0x87   :  { %v1816_v40 = vpop.permute.xlu1 %1309  ;;  %v1361_v60 = vunpack.i.l.bf16 %v1828_v44 }
  0x88   :  { %v1818_v41 = vpop.permute.xlu0 %1304  ;;  %v2652_v42 = vunpack.i.h.bf16 %v1816_v40 }
  0x8a   :  { %v1826_v43 = vsel %vm2662_vm2, %v2652_v42, %v2659_v39  ;;  %v1276_v39 = vunpack.i.l.bf16 %v1788_v28 }
  0x8e   :  { %v1846_v53 = vpop.permute.xlu2 %1374 }
  0x8f   :  { %v1830_v45 = vpop.permute.xlu1 %1324  ;;  %v1376_v17 = vunpack.i.l.bf16 %v1846_v53 }
  0x90   :  { %v1832_v46 = vpop.permute.xlu0 %1319 }
  0x91   :  { %v2650_v48 = vunpack.i.l.bf16 %v1832_v46 }
  0x93   :  { %v1841_v49 = vsel %vm2662_vm2, %v1317_v47, %v2650_v48 }
  0x96   :  { %v1861_v8 = vpop.permute.xlu2 %1389 }
  0x97   :  { %v1340_v51 = vpop.permute.xlu1 %1339 }
  0x98   :  { %v1844_v52 = vpop.permute.xlu0 %1334  ;;  %v1342_v54 = vunpack.i.h.bf16 %v1340_v51  ;;  %v1341_v55 = vunpack.i.l.bf16 %v1340_v51 }
  0x99   :  { %v1336_v56 = vunpack.i.l.bf16 %v1844_v52  ;;  %v1337_v63 = vunpack.i.h.bf16 %v1844_v52 }
  0x9a   :  { %v295_v58 = vsel %vm2667_vm3, %v1342_v54, %v1346_v50  ;;  %v294_v59 = vsel %vm2667_vm3, %v1341_v55, %v1342_v54 }
  0x9b   :  { %v334_v57 = vsel %vm2668_vm0, %v1332_v26, %v1336_v56  ;;  %402 = vmatpush.msra.mxu2 %v294_v59  ;;  %v1391_v59 = vunpack.i.l.bf16 %v1861_v8 }
  0x9c   :  { %421 = vmatpush.msra.mxu3 %v334_v57 }
  0x9e   :  { %422 = vmatpush.msra.mxu3 %v295_v58  ;;  %v1884_v58 = vpop.permute.xlu2 %1404 }
  0x9f   :  { %v1355_v61 = vpop.permute.xlu1 %1354 }
  0xa0   :  { %v1857_v62 = vpop.permute.xlu0 %1349  ;;  %v1357_v1 = vunpack.i.h.bf16 %v1355_v61  ;;  %v1356_v3 = vunpack.i.l.bf16 %v1355_v61  ;;  %v2653_v61 = vunpack.i.h.bf16 %v1884_v58 }
  0xa1   :  { %v1351_v7 = vunpack.i.l.bf16 %v1857_v62 }
  0xa2   :  { %v256_v15 = vsel %vm2666_vm4, %v1357_v1, %v1361_v60  ;;  %v255_v16 = vsel %vm2666_vm4, %v1356_v3, %v1357_v1 }
  0xa3   :  { %v331_v13 = vsel %vm2668_vm0, %v1337_v63, %v1351_v7  ;;  %v332_v14 = vsel %vm2668_vm0, %v1351_v7, %v1331_v27  ;;  %423 = vmatpush.msra.mxu3 %v256_v15  ;;  %403 = vmatpush.msra.mxu2 %v255_v16  ;;  %v2654_v15 = vunpack.i.l.bf16 %v1816_v40  ;;  %v1406_v16 = vunpack.i.l.bf16 %v1884_v58 }
  0xa4   :  { %361 = vmatpush.msra.mxu0 %v331_v13  ;;  %381 = vmatpush.msra.mxu1 %v332_v14 }
  0xa6   :  { %v1918_v35 = vpop.permute.xlu2 %1419 }
  0xa7   :  { %v1870_v18 = vpop.permute.xlu1 %1369 }
  0xa8   :  { %v1872_v19 = vpop.permute.xlu0 %1364  ;;  %v1372_v24 = vunpack.i.h.bf16 %v1870_v18  ;;  %v1371_v26 = vunpack.i.l.bf16 %v1870_v18 }
  0xa9   :  { %v1366_v27 = vunpack.i.l.bf16 %v1872_v19 }
  0xaa   :  { %v217_v54 = vsel %vm2665_vm5, %v1372_v24, %v1376_v17  ;;  %v216_v57 = vsel %vm2665_vm5, %v1371_v26, %v1372_v24 }
  0xab   :  { %v292_v29 = vsel %vm2667_vm3, %v1347_v20, %v1366_v27  ;;  %v293_v51 = vsel %vm2667_vm3, %v1366_v27, %v1341_v55  ;;  %424 = vmatpush.msra.mxu3 %v217_v54  ;;  %404 = vmatpush.msra.mxu2 %v216_v57  ;;  %v1362_v55 = vunpack.i.h.bf16 %v1828_v44  ;;  %v1327_v54 = vunpack.i.h.bf16 %v1830_v45 }
  0xac   :  { %362 = vmatpush.msra.mxu0 %v292_v29  ;;  %382 = vmatpush.msra.mxu1 %v293_v51  ;;  %v1307_v29 = vunpack.i.h.bf16 %v1818_v41  ;;  %v1306_v51 = vunpack.i.l.bf16 %v1818_v41  ;;  %v2657_v57 = vunpack.i.l.bf16 %v1786_v25 }
  0xae   :  { %v100_v48 = vsel %vm2662_vm2, %v1307_v29, %v2654_v15 }
  0xaf   :  { %v1888_v63 = vpop.permute.xlu1 %1384 }
  0xb0   :  { %v1890_v1 = vpop.permute.xlu0 %1379  ;;  %v1387_v7 = vunpack.i.h.bf16 %v1888_v63  ;;  %v1386_v13 = vunpack.i.l.bf16 %v1888_v63 }
  0xb1   :  { %v1381_v14 = vunpack.i.l.bf16 %v1890_v1 }
  0xb2   :  { %v177_v24 = vsel %vm2664_vm6, %v1386_v13, %v1387_v7  ;;  %v178_v27 = vsel %vm2664_vm6, %v1387_v7, %v1391_v59  ;;  %v1281_v7 = vunpack.i.l.bf16 %v1794_v32 }
  0xb3   :  { %v253_v18 = vsel %vm2666_vm4, %v1362_v55, %v1381_v14  ;;  %v254_v20 = vsel %vm2666_vm4, %v1381_v14, %v1356_v3  ;;  %v139_v3 = vsel %vm2663_vm7, %v1406_v16, %v2653_v61  ;;  %405 = vmatpush.msra.mxu2 %v177_v24  ;;  %425 = vmatpush.msra.mxu3 %v178_v27  ;;  %v1282_v55 = vunpack.i.h.bf16 %v1794_v32 }
  0xb4   :  { %363 = vmatpush.msra.mxu0 %v253_v18  ;;  %383 = vmatpush.msra.mxu1 %v254_v20  ;;  %v138_v14 = vsel %vm2663_vm7, %v1327_v54, %v1406_v16  ;;  %v1377_v18 = vunpack.i.h.bf16 %v1846_v53  ;;  %v99_v27 = vsel %vm2662_vm2, %v1306_v51, %v1307_v29  ;;  %v1352_v16 = vunpack.i.h.bf16 %v1857_v62 }
  0xb5   :  { %406 = vmatpush.msra.mxu2 %v138_v14  ;;  %426 = vmatpush.msra.mxu3 %v139_v3  ;;  %v60_v42 = vsel %vm2661_vm1, %v1281_v7, %v1282_v55  ;;  %v61_v61 = vsel %vm2661_vm1, %v1282_v55, %v2657_v57  ;;  %v2670_v53 = vunpack.i.l.bf16 %v1784_v23 }
  0xb7   :  { %v1921_v20 = vpop.permute.xlu1 %1399  ;;  %407 = vmatpush.msra.mxu2 %v99_v27  ;;  %427 = vmatpush.msra.mxu3 %v100_v48  ;;  %v1949_v48 = vld [vmem:[%s2645_s2] sm:$0xff]  ;;  %v1302_v27 = vunpack.i.h.bf16 %v1781_v22 }
  0xb8   :  { %v1923_v24 = vpop.permute.xlu0 %1394  ;;  %v2656_v30 = vunpack.i.h.bf16 %v1921_v20  ;;  %v1401_v3 = vunpack.i.l.bf16 %v1921_v20 }
  0xb9   :  { %v1396_v14 = vunpack.i.l.bf16 %v1923_v24  ;;  %408 = vmatpush.msra.mxu2 %v60_v42  ;;  %428 = vmatpush.msra.mxu3 %v61_v61  ;;  %v1421_v61 = vunpack.i.l.bf16 %v1918_v35 }
  0xba   :  { %v337_v34 = vsel %vm2668_vm0, %v1352_v16, %v1401_v3  ;;  %v338_v42 = vsel %vm2668_vm0, %v1401_v3, %v2656_v30  ;;  %v1301_v3 = vunpack.i.l.bf16 %v1781_v22  ;;  %v1277_v22 = vunpack.i.h.bf16 %v1788_v28 }
  0xbb   :  { %v214_v29 = vsel %vm2665_vm5, %v1377_v18, %v1396_v14  ;;  %v215_v15 = vsel %vm2665_vm5, %v1396_v14, %v1371_v26  ;;  %409 = vmatpush.msra.mxu2 %v1721_v11  ;;  %429 = vmatpush.msra.mxu3 %v1726_v12  ;;  %v1392_v26 = vunpack.i.h.bf16 %v1861_v8  ;;  %v1367_v11 = vunpack.i.h.bf16 %v1872_v19 }
  0xbc   :  { %364 = vmatpush.msra.mxu0 %v214_v29  ;;  %384 = vmatpush.msra.mxu1 %v215_v15  ;;  %v1326_v14 = vunpack.i.l.bf16 %v1830_v45  ;;  %v1973_v29 = vpop.permute.xlu2 %1434  ;;  %v137_v63 = vsel %vm2663_vm7, %v1421_v61, %v1327_v54  ;;  %v1382_v45 = vunpack.i.h.bf16 %v1890_v1  ;;  %v1422_v19 = vunpack.i.h.bf16 %v1918_v35 }
  0xbd   :  { %481 = vmatpush.msrb.mxu2 %v337_v34  ;;  %1232 = vmatmul.msk.f32.vlgmr.msra.gmra.mxu3 %vm2660_vm8, %v1949_v48  ;;  %v2672_v8 = vunpack.i.l.bf16 %v1792_v31 }
  0xbe   :  { %1231 = vmatmul.msk.f32.vlgmr.msra.gmra.mxu2 %vm2660_vm8, %v1949_v48  ;;  %501 = vmatpush.msrb.mxu3 %v338_v42 }
  0xbf   :  { %v1962_v15 = vpop.permute.xlu1 %1414 }
  0xc0   :  { %v1964_v55 = vpop.permute.xlu0 %1409  ;;  %v1417_v12 = vunpack.i.h.bf16 %v1962_v15  ;;  %v1416_v34 = vunpack.i.l.bf16 %v1962_v15 }
  0xc1   :  { %v1411_v18 = vunpack.i.l.bf16 %v1964_v55 }
  0xc2   :  { %v298_v57 = vsel %vm2667_vm3, %v1367_v11, %v1416_v34  ;;  %v299_v33 = vsel %vm2667_vm3, %v1416_v34, %v1417_v12  ;;  %v98_v34 = vsel %vm2662_vm2, %v1302_v27, %v1306_v51 }
  0xc3   :  { %v175_v42 = vsel %vm2664_vm6, %v1392_v26, %v1411_v18  ;;  %v176_v30 = vsel %vm2664_vm6, %v1411_v18, %v1386_v13  ;;  %482 = vmatpush.msrb.mxu2 %v298_v57  ;;  %v136_v26 = vsel %vm2663_vm7, %v1326_v14, %v1421_v61  ;;  %502 = vmatpush.msrb.mxu3 %v299_v33  ;;  %v1436_v57 = vunpack.i.l.bf16 %v1973_v29 }
  0xc4   :  { %365 = vmatpush.msra.mxu0 %v175_v42  ;;  %385 = vmatpush.msra.mxu1 %v176_v30  ;;  %v97_v13 = vsel %vm2662_vm2, %v1301_v3, %v1302_v27  ;;  %v58_v30 = vsel %vm2661_vm1, %v1276_v39, %v1277_v22  ;;  %v59_v33 = vsel %vm2661_vm1, %v1277_v22, %v1281_v7  ;;  %v1397_v61 = vunpack.i.h.bf16 %v1923_v24  ;;  %v2014_v7 = vpop.permute.xlu2 %1449 }
  0xc5   :  { %v1437_v39 = vunpack.i.h.bf16 %v1973_v29  ;;  %v1412_v27 = vunpack.i.h.bf16 %v1964_v55  ;;  %v2680_v29 = vunpack.i.l.bf16 %v1776_v21 }
  0xc6   :  { %366 = vmatpush.msra.mxu0 %v136_v26  ;;  %386 = vmatpush.msra.mxu1 %v137_v63 }
  0xc7   :  { %v1995_v18 = vpop.permute.xlu1 %1429 }
  0xc8   :  { %v1997_v28 = vpop.permute.xlu0 %1424  ;;  %367 = vmatpush.msra.mxu0 %v97_v13  ;;  %387 = vmatpush.msra.mxu1 %v98_v34  ;;  %v1431_v54 = vunpack.i.l.bf16 %v1995_v18 }
  0xc9   :  { %v1427_v41 = vunpack.i.h.bf16 %v1997_v28  ;;  %v1426_v51 = vunpack.i.l.bf16 %v1997_v28 }
  0xca   :  { %368 = vmatpush.msra.mxu0 %v58_v30  ;;  %388 = vmatpush.msra.mxu1 %v59_v33  ;;  %v335_v1 = vsel %vm2668_vm0, %v1336_v56, %v1431_v54  ;;  %v336_v24 = vsel %vm2668_vm0, %v1431_v54, %v1352_v16  ;;  %v1451_v56 = vunpack.i.l.bf16 %v2014_v7 }
  0xcb   :  { %v259_v32 = vsel %vm2666_vm4, %v1382_v45, %v1426_v51  ;;  %v260_v52 = vsel %vm2666_vm4, %v1426_v51, %v1427_v41 }
  0xcc   :  { %369 = vmatpush.msra.mxu0 %v1694_v5  ;;  %389 = vmatpush.msra.mxu1 %v1699_v6  ;;  %v220_v5 = vsel %vm2665_vm5, %v1397_v61, %v1436_v57  ;;  %v221_v6 = vsel %vm2665_vm5, %v1436_v57, %v1437_v39  ;;  %v257_v13 = vsel %vm2666_vm4, %v1361_v60, %v1451_v56 }
  0xcd   :  { %483 = vmatpush.msrb.mxu2 %v259_v32  ;;  %1229 = vmatmul.msk.f32.vlgmr.msra.gmra.mxu0 %vm2660_vm8, %v1949_v48  ;;  %v258_v38 = vsel %vm2666_vm4, %v1451_v56, %v1382_v45 }
  0xce   :  { %1230 = vmatmul.msk.f32.vlgmr.msra.gmra.mxu1 %vm2660_vm8, %v1949_v48  ;;  %441 = vmatpush.msrb.mxu0 %v335_v1  ;;  %v2671_v1 = vunpack.i.h.bf16 %v1792_v31  ;;  %v2674_v31 = vunpack.i.h.bf16 %v1816_v40 }
  0xcf   :  { %461 = vmatpush.msrb.mxu1 %v336_v24  ;;  %484 = vmatpush.msrb.mxu2 %v220_v5  ;;  %v2033_v62 = vpop.permute.xlu1 %1444 }
  0xd0   :  { %v2035_v16 = vpop.permute.xlu0 %1439  ;;  %503 = vmatpush.msrb.mxu3 %v260_v52  ;;  %v1447_v3 = vunpack.i.h.bf16 %v2033_v62  ;;  %v1446_v14 = vunpack.i.l.bf16 %v2033_v62  ;;  %v2673_v52 = vunpack.i.h.bf16 %v1884_v58  ;;  %v1645_v62 = vmov 480.0  }
  0xd1   :  { %v1441_v42 = vunpack.i.l.bf16 %v2035_v16  ;;  %1633 = vrcp.f32 %v1645_v62 }
  0xd2   :  { %504 = vmatpush.msrb.mxu3 %v221_v6  ;;  %v181_v63 = vsel %vm2664_vm6, %v1412_v27, %v1446_v14  ;;  %v182_v55 = vsel %vm2664_vm6, %v1446_v14, %v1447_v3  ;;  %v1452_v6 = vunpack.i.h.bf16 %v2014_v7  ;;  %v1322_v7 = vunpack.i.h.bf16 %v1832_v46 }
  0xd3   :  { %v296_v22 = vsel %vm2667_vm3, %v1346_v50, %v1441_v42  ;;  %v297_v26 = vsel %vm2667_vm3, %v1441_v42, %v1367_v11  ;;  %485 = vmatpush.msrb.mxu2 %v181_v63  ;;  %v2055_v50 = vpop.permute.xlu2 %1464 }
  0xd4   :  { %442 = vmatpush.msrb.mxu0 %v296_v22  ;;  %462 = vmatpush.msrb.mxu1 %v297_v26  ;;  %v1466_v30 = vunpack.i.l.bf16 %v2055_v50  ;;  %v1646_v22 = vmov 24.0  }
  0xd5   :  { %505 = vmatpush.msrb.mxu3 %v182_v55  ;;  %1635 = vrcp.f32 %v1646_v22 }
  0xd6   :  { %443 = vmatpush.msrb.mxu0 %v257_v13  ;;  %463 = vmatpush.msrb.mxu1 %v258_v38  ;;  %v179_v57 = vsel %vm2664_vm6, %v1391_v59, %v1466_v30  ;;  %v180_v32 = vsel %vm2664_vm6, %v1466_v30, %v1412_v27  ;;  %v64_v59 = vsel %vm2661_vm1, %v2672_v8, %v2671_v1 }
  0xd7   :  { %v1460_v11 = vpop.permute.xlu1 %1459  ;;  %v1634_v27 = vpop.eup %1633 }
  0xd8   :  { %v2058_v34 = vpop.permute.xlu0 %1454  ;;  %v1461_v33 = vunpack.i.l.bf16 %v1460_v11  ;;  %v563_v14 = vmul.f32 480.0, %v1634_v27  ;;  %vm567_vm9 = vweird.f32 %v1634_v27 }
  0xd9   :  { %v1457_v54 = vunpack.i.h.bf16 %v2058_v34  ;;  %v1456_v44 = vunpack.i.l.bf16 %v2058_v34 }
  0xda   :  { %v218_v60 = vsel %vm2665_vm5, %v1376_v17, %v1461_v33  ;;  %v219_v45 = vsel %vm2665_vm5, %v1461_v33, %v1397_v61  ;;  %v103_v17 = vsel %vm2662_vm2, %v2670_v53, %v1317_v47 }
  0xdb   :  { %v142_v51 = vsel %vm2663_vm7, %v1422_v19, %v1456_v44  ;;  %v143_v35 = vsel %vm2663_vm7, %v1456_v44, %v1457_v54  ;;  %444 = vmatpush.msrb.mxu0 %v218_v60  ;;  %464 = vmatpush.msrb.mxu1 %v219_v45  ;;  %v1636_v38 = vpop.eup %1635 }
  0xdc   :  { %486 = vmatpush.msrb.mxu2 %v142_v51  ;;  %506 = vmatpush.msrb.mxu3 %v143_v35  ;;  %vm610_vm10 = vweird.f32 %v1636_v38 }
  0xdd   :  { %445 = vmatpush.msrb.mxu0 %v179_v57  ;;  %465 = vmatpush.msrb.mxu1 %v180_v32 }
  0xde   :  { %487 = vmatpush.msrb.mxu2 %v103_v17  ;;  %507 = vmatpush.msrb.mxu3 %v1841_v49  ;;  %v2675_v49 = vunpack.i.l.bf16 %v1816_v40  ;;  %v1442_v40 = vunpack.i.h.bf16 %v2035_v16 }
  0xe0   :  { %v1470_v61 = vpop.permute.xlu0 %1469  ;;  %488 = vmatpush.msrb.mxu2 %v64_v59  ;;  %508 = vmatpush.msrb.mxu3 %v1804_v36  ;;  %v101_v5 = vsel %vm2662_vm2, %v2675_v49, %v2674_v31  ;;  %v1432_v36 = vunpack.i.h.bf16 %v1995_v18  ;;  %v2678_v18 = vunpack.i.h.bf16 %v1921_v20 }
  0xe1   :  { %v1471_v24 = vunpack.i.l.bf16 %v1470_v61 }
  0xe2   :  { %489 = vmatpush.msrb.mxu2 %v1711_v9  ;;  %509 = vmatpush.msrb.mxu3 %v1716_v10  ;;  %v2676_v9 = vunpack.i.h.bf16 %v1786_v25  ;;  %v2677_v10 = vunpack.i.l.bf16 %v1786_v25  ;;  %v339_v56 = vsel %vm2668_vm0, %v2678_v18, %v1432_v36  ;;  %v1462_v25 = vunpack.i.h.bf16 %v1460_v11 }
  0xe3   :  { %v140_v23 = vsel %vm2663_vm7, %v2673_v52, %v1471_v24  ;;  %v141_v47 = vsel %vm2663_vm7, %v1471_v24, %v1422_v19  ;;  %1235 = vmatmul.msk.f32.vlgmr.msrb.gmra.mxu2 %vm2660_vm8, %v1949_v48  ;;  %1236 = vmatmul.msk.f32.vlgmr.msrb.gmra.mxu3 %vm2660_vm8, %v1949_v48  ;;  %v606_v11 = vmul.f32 24.0, %v1636_v38 }
  0xe4   :  { %446 = vmatpush.msrb.mxu0 %v140_v23  ;;  %466 = vmatpush.msrb.mxu1 %v141_v47  ;;  %v62_v58 = vsel %vm2661_vm1, %v2677_v10, %v2676_v9  ;;  %v222_v20 = vsel %vm2665_vm5, %v1437_v39, %v1462_v25 }
  0xe6   :  { %447 = vmatpush.msrb.mxu0 %v101_v5  ;;  %467 = vmatpush.msrb.mxu1 %v1826_v43  ;;  %v261_v43 = vsel %vm2666_vm4, %v1427_v41, %v1452_v6  ;;  %v2679_v41 = vunpack.i.l.bf16 %v1832_v46  ;;  %v564_v46 = vsub.f32 1.0, %v563_v14 }
  0xe8   :  { %448 = vmatpush.msrb.mxu0 %v62_v58  ;;  %468 = vmatpush.msrb.mxu1 %v1811_v37  ;;  %v300_v37 = vsel %vm2667_vm3, %v1417_v12, %v1442_v40  ;;  %v1297_v12 = vunpack.i.h.bf16 %v1776_v21  ;;  %v105_v16 = vsel %vm2662_vm2, %v2679_v41, %v1322_v7  ;;  %v565_v63 = vmul.f32 %v1634_v27, %v564_v46 }
  0xea   :  { %449 = vmatpush.msrb.mxu0 %v1683_v2  ;;  %469 = vmatpush.msrb.mxu1 %v1689_v4  ;;  %v1467_v2 = vunpack.i.h.bf16 %v2055_v50  ;;  %v1472_v4 = vunpack.i.h.bf16 %v1470_v61  ;;  %v66_v39 = vsel %vm2661_vm1, %v2680_v29, %v1297_v12  ;;  %v566_v13 = vadd.f32 %v1634_v27, %v565_v63 }
  0xeb   :  { %1234 = vmatmul.msk.f32.vlgmr.msrb.gmra.mxu1 %vm2660_vm8, %v1949_v48  ;;  %1233 = vmatmul.msk.f32.vlgmr.msrb.gmra.mxu0 %vm2660_vm8, %v1949_v48 }
  0xec   :  { %521 = vmatpush.msra.mxu0 %v339_v56  ;;  %v183_v15 = vsel %vm2664_vm6, %v1447_v3, %v1467_v2  ;;  %v144_v28 = vsel %vm2663_vm7, %v1457_v54, %v1472_v4  ;;  %v534_v3 = vlaneseq  ;;  %v2148_v19 = vsel %vm567_vm9, %v1634_v27, %v566_v13 }
  0xed   :  { %v607_v54 = vsub.f32 1.0, %v606_v11 }
  0xee   :  { %522 = vmatpush.msra.mxu0 %v300_v37  ;;  %v2144_v42 = vand.u32 127, %v534_v3 }
  0xef   :  { %v608_v35 = vmul.f32 %v1636_v38, %v607_v54 }
  0xf0   :  { %523 = vmatpush.msra.mxu0 %v261_v43  ;;  %v537_v21 = vadd.s32 256, %v2144_v42  ;;  %v538_v26 = vadd.s32 384, %v2144_v42  ;;  %v536_v34 = vadd.s32 128, %v2144_v42  ;;  %v544_v44 = vcvt.s32.f32 %v2144_v42 }
  0xf1   :  { %v609_v61 = vadd.f32 %v1636_v38, %v608_v35  ;;  %v540_v7 = vadd.s32 640, %v2144_v42 }
  0xf2   :  { %524 = vmatpush.msra.mxu0 %v222_v20  ;;  %v546_v55 = vcvt.s32.f32 %v537_v21  ;;  %v545_v60 = vcvt.s32.f32 %v536_v34  ;;  %v553_v57 = vadd.f32 0.5, %v544_v44  ;;  %v539_v20 = vadd.s32 512, %v2144_v42 }
  0xf3   :  { %v2156_v52 = vsel %vm610_vm10, %v1636_v38, %v609_v61  ;;  %v549_v41 = vcvt.s32.f32 %v540_v7  ;;  %v541_v44 = vadd.s32 768, %v2144_v42 }
  0xf4   :  { %525 = vmatpush.msra.mxu0 %v183_v15  ;;  %v554_v32 = vadd.f32 0.5, %v545_v60  ;;  %v569_v1 = vmul.f32 %v2148_v19, %v553_v57  ;;  %v542_v60 = vadd.s32 896, %v2144_v42 }
  0xf5   :  { %v558_v62 = vadd.f32 0.5, %v549_v41 }
  0xf6   :  { %526 = vmatpush.msra.mxu0 %v144_v28  ;;  %v570_v8 = vmul.f32 %v2148_v19, %v554_v32  ;;  %v578_v23 = vfloor.f32 %v569_v1  ;;  %v548_v28 = vcvt.s32.f32 %v539_v20 }
  0xf7   :  { %v574_v46 = vmul.f32 %v2148_v19, %v558_v62 }
  0xf8   :  { %527 = vmatpush.msra.mxu0 %v105_v16  ;;  %v579_v47 = vfloor.f32 %v570_v8  ;;  %v587_v5 = vmul.f32 480.0, %v578_v23 }
  0xfa   :  { %528 = vmatpush.msra.mxu0 %v66_v39  ;;  %v588_v36 = vmul.f32 480.0, %v579_v47  ;;  %v596_v58 = vsub.f32 %v553_v57, %v587_v5  ;;  %v557_v39 = vadd.f32 0.5, %v548_v28 }
  0xfc   :  { %529 = vmatpush.msra.mxu0 %v1675_v0  ;;  %v547_v0 = vcvt.s32.f32 %v538_v26  ;;  %v597_v40 = vsub.f32 %v554_v32, %v588_v36  ;;  %v612_v56 = vmul.f32 %v2156_v52, %v596_v58  ;;  %v573_v14 = vmul.f32 %v2148_v19, %v557_v39 }
  0xfd   :  { %1237 = vmatmul.msk.f32.vlgmr.msra.gmra.mxu0 %vm2660_vm8, %v1949_v48  ;;  %v555_v48 = vadd.f32 0.5, %v546_v55  ;;  %v2681_v26 = vmov 0 }
  0xfe   :  { %v556_v50 = vadd.f32 0.5, %v547_v0  ;;  %v613_v25 = vmul.f32 %v2156_v52, %v597_v40  ;;  %v621_v43 = vfloor.f32 %v612_v56  ;;  %v582_v55 = vfloor.f32 %v573_v14 }
  0xff   :  { %v571_v30 = vmul.f32 %v2148_v19, %v555_v48  ;;  %v583_v0 = vfloor.f32 %v574_v46 }
 0x100   :  { %v572_v33 = vmul.f32 %v2148_v19, %v556_v50  ;;  %v622_v4 = vfloor.f32 %v613_v25  ;;  %v630_v16 = vmul.f32 24.0, %v621_v43  ;;  %vm657_vm5 = vcmp.ge.f32.partialorder %v621_v43, 1.0 }
 0x101   :  { %v580_v45 = vfloor.f32 %v571_v30  ;;  %v591_v30 = vmul.f32 480.0, %v582_v55 }
 0x102   :  { %v581_v51 = vfloor.f32 %v572_v33  ;;  %v631_v29 = vmul.f32 24.0, %v622_v4  ;;  %v639_v27 = vsub.f32 %v596_v58, %v630_v16  ;;  %v592_v33 = vmul.f32 480.0, %v583_v0 }
 0x103   :  { %v589_v53 = vmul.f32 480.0, %v580_v45  ;;  %v550_v45 = vcvt.s32.f32 %v541_v44 }
 0x104   :  { %v590_v17 = vmul.f32 480.0, %v581_v51  ;;  %v640_v3 = vsub.f32 %v597_v40, %v631_v29  ;;  %v1238_v22 = vadd.f32 -0.5, %v639_v27  ;;  %v600_v51 = vsub.f32 %v557_v39, %v591_v30 }
 0x105   :  { %v598_v59 = vsub.f32 %v555_v48, %v589_v53  ;;  %v601_v35 = vsub.f32 %v558_v62, %v592_v33  ;;  %v559_v53 = vadd.f32 0.5, %v550_v45  ;;  %v543_v62 = vadd.s32 1024, %v2144_v42 }
 0x106   :  { %v599_v24 = vsub.f32 %v556_v50, %v590_v17  ;;  %v1239_v63 = vadd.f32 -0.5, %v640_v3  ;;  %v551_v17 = vcvt.s32.f32 %v542_v60  ;;  %v616_v23 = vmul.f32 %v2156_v52, %v600_v51 }
 0x107   :  { %v614_v31 = vmul.f32 %v2156_v52, %v598_v59  ;;  %v617_v47 = vmul.f32 %v2156_v52, %v601_v35  ;;  %v575_v5 = vmul.f32 %v2148_v19, %v559_v53  ;;  %v552_v27 = vcvt.s32.f32 %v543_v62 }
 0x108   :  { %v615_v49 = vmul.f32 %v2156_v52, %v599_v24  ;;  %v560_v36 = vadd.f32 0.5, %v551_v17  ;;  %v625_v58 = vfloor.f32 %v616_v23 }
 0x109   :  { %v623_v9 = vfloor.f32 %v614_v31  ;;  %v626_v40 = vfloor.f32 %v617_v47  ;;  %v561_v46 = vadd.f32 0.5, %v552_v27 }
 0x10a   :  { %v624_v10 = vfloor.f32 %v615_v49 }
 0x10b   :  { %v632_v6 = vmul.f32 24.0, %v623_v9  ;;  %vm659_vm11 = vcmp.ge.f32.partialorder %v623_v9, 1.0  ;;  %vm668_vm14 = vcmp.le.f32.partialorder %v623_v9, 16.0  ;;  %v577_v30 = vmul.f32 %v2148_v19, %v561_v46 }
 0x10c   :  { %v633_v18 = vmul.f32 24.0, %v624_v10  ;;  %vm660_vm12 = vcmp.ge.f32.partialorder %v624_v10, 1.0  ;;  %vm669_vm13 = vcmp.le.f32.partialorder %v624_v10, 16.0  ;;  %vm677_vm10 = vmand %vm659_vm11, %vm668_vm14  ;;  %vm666_vm11 = vcmp.le.f32.partialorder %v621_v43, 16.0 }
 0x10d   :  { %v641_v37 = vsub.f32 %v598_v59, %v632_v6  ;;  %vm678_vm15 = vmand %vm660_vm12, %vm669_vm13  ;;  %vm667_vm13 = vcmp.le.f32.partialorder %v622_v4, 16.0  ;;  %v584_v6 = vfloor.f32 %v575_v5 }
 0x10e   :  { %v642_v2 = vsub.f32 %v599_v24, %v633_v18  ;;  %v576_v18 = vmul.f32 %v2148_v19, %v560_v36  ;;  %v586_v19 = vfloor.f32 %v577_v30 }
 0x10f   :  { %v1240_v15 = vadd.f32 -0.5, %v641_v37  ;;  %v593_v56 = vmul.f32 480.0, %v584_v6  ;;  %v634_v37 = vmul.f32 24.0, %v625_v58 }
 0x110   :  { %v1241_v12 = vadd.f32 -0.5, %v642_v2  ;;  %v585_v25 = vfloor.f32 %v576_v18  ;;  %v635_v2 = vmul.f32 24.0, %v626_v40 }
 0x111   :  { %vm686_vm8 = vcmp.ge.f32.partialorder %v1240_v15, 1.0  ;;  %vm704_vm6 = vcmp.le.f32.partialorder %v1240_v15, 16.0  ;;  %v643_v7 = vsub.f32 %v600_v51, %v634_v37 }
 0x112   :  { %vm687_vm9 = vcmp.ge.f32.partialorder %v1241_v12, 1.0  ;;  %vm705_vm2 = vcmp.le.f32.partialorder %v1241_v12, 16.0  ;;  %vm695_vm7 = vmand %vm677_vm10, %vm686_vm8  ;;  %vm658_vm8 = vcmp.ge.f32.partialorder %v622_v4, 1.0  ;;  %v594_v43 = vmul.f32 480.0, %v585_v25 }
 0x113   :  { %vm696_vm1 = vmand %vm678_vm15, %vm687_vm9  ;;  %vm702_vm15 = vcmp.le.f32.partialorder %v1238_v22, 16.0  ;;  %vm703_vm9 = vcmp.le.f32.partialorder %v1239_v63, 16.0  ;;  %v602_v4 = vsub.f32 %v559_v53, %v593_v56  ;;  %v644_v15 = vsub.f32 %v601_v35, %v635_v2 }
 0x114   :  { %vm2168_vm4 = vmand %vm696_vm1, %vm705_vm2  ;;  %vm684_vm2 = vcmp.ge.f32.partialorder %v1238_v22, 1.0  ;;  %v603_v20 = vsub.f32 %v560_v36, %v594_v43  ;;  %v1242_v41 = vadd.f32 -0.5, %v643_v7  ;;  %v595_v35 = vmul.f32 480.0, %v586_v19 }
 0x115   :  { %v2682_v26 = vsel %vm2168_vm4, 4294967295, %v2681_v26  ;;  %vm2174_vm12 = vmand %vm695_vm7, %vm704_vm6  ;;  %vm685_vm7 = vcmp.ge.f32.partialorder %v1239_v63, 1.0  ;;  %v618_v12 = vmul.f32 %v2156_v52, %v602_v4  ;;  %v1243_v16 = vadd.f32 -0.5, %v644_v15 }
 0x116   :  { %vm675_vm1 = vmand %vm657_vm5, %vm666_vm11  ;;  %v619_v28 = vmul.f32 %v2156_v52, %v603_v20  ;;  %vm706_vm0 = vcmp.le.f32.partialorder %v1242_v41, 16.0 }
 0x117   :  { %vm676_vm6 = vmand %vm658_vm8, %vm667_vm13  ;;  %vm662_vm8 = vcmp.ge.f32.partialorder %v626_v40, 1.0  ;;  %vm671_vm13 = vcmp.le.f32.partialorder %v626_v40, 16.0  ;;  %v627_v29 = vfloor.f32 %v618_v12 }
 0x118   :  { %vm693_vm14 = vmand %vm675_vm1, %vm684_vm2  ;;  %vm661_vm1 = vcmp.ge.f32.partialorder %v625_v58, 1.0  ;;  %vm670_vm2 = vcmp.le.f32.partialorder %v625_v58, 16.0  ;;  %v628_v39 = vfloor.f32 %v619_v28 }
 0x119   :  { %vm694_vm5 = vmand %vm676_vm6, %vm685_vm7  ;;  %vm689_vm7 = vcmp.ge.f32.partialorder %v1243_v16, 1.0  ;;  %v636_v3 = vmul.f32 24.0, %v627_v29 }
 0x11a   :  { %vm2193_vm10 = vmand %vm693_vm14, %vm702_vm15  ;;  %vm688_vm15 = vcmp.ge.f32.partialorder %v1242_v41, 1.0  ;;  %v637_v14 = vmul.f32 24.0, %v628_v39 }
 0x11b   :  { %vm2200_vm11 = vmand %vm694_vm5, %vm703_vm9  ;;  %vm707_vm9 = vcmp.le.f32.partialorder %v1243_v16, 16.0  ;;  %v645_v22 = vsub.f32 %v602_v4, %v636_v3 }
 0x11c   :  { %vm680_vm6 = vmand %vm662_vm8, %vm671_vm13  ;;  %v646_v55 = vsub.f32 %v603_v20, %v637_v14  ;;  %vm664_vm13 = vcmp.ge.f32.partialorder %v628_v39, 1.0 }
 0x11d   :  { %vm679_vm14 = vmand %vm661_vm1, %vm670_vm2  ;;  %v1244_v44 = vadd.f32 -0.5, %v645_v22  ;;  %vm673_vm1 = vcmp.le.f32.partialorder %v628_v39, 16.0 }
 0x11e   :  { %vm698_vm5 = vmand %vm680_vm6, %vm689_vm7  ;;  %v1245_v45 = vadd.f32 -0.5, %v646_v55 }
 0x11f   :  { %vm697_vm3 = vmand %vm679_vm14, %vm688_vm15  ;;  %vm690_vm6 = vcmp.ge.f32.partialorder %v1244_v44, 1.0 }
 0x120   :  { %vm2255_vm8 = vmand %vm697_vm3, %vm706_vm0  ;;  %vm663_vm0 = vcmp.ge.f32.partialorder %v627_v29, 1.0  ;;  %vm672_vm3 = vcmp.le.f32.partialorder %v627_v29, 16.0  ;;  %vm691_vm14 = vcmp.ge.f32.partialorder %v1245_v45, 1.0 }
 0x121   :  { %vm681_vm2 = vmand %vm663_vm0, %vm672_vm3  ;;  %vm709_vm0 = vcmp.le.f32.partialorder %v1245_v45, 16.0 }
 0x122   :  { %vm682_vm7 = vmand %vm664_vm13, %vm673_vm1 }
 0x123   :  { %vm699_vm15 = vmand %vm681_vm2, %vm690_vm6 }
 0x140   :  { %v2166_v21 = vpop.f32.mrf.mxu3 }
 0x141   :  { %v2172_v13 = vpop.f32.mrf.mxu2  ;;  %v723_v48 = vmax.f32 %v2166_v21, 0.0 }
 0x142   :  { %v722_v50 = vmax.f32 %v2172_v13, 0.0 }
 0x143   :  { %v750_v11 = vsel %vm2168_vm4, %v723_v48, 0.0  ;;  %vm2245_vm4 = vmand %vm698_vm5, %vm707_vm9  ;;  %vm708_vm5 = vcmp.le.f32.partialorder %v1244_v44, 16.0 }
 0x144   :  { %v749_v34 = vsel %vm2174_vm12, %v722_v50, 0.0  ;;  %vm700_vm9 = vmand %vm682_vm7, %vm691_vm14 }
 0x145   :  { %v1478_v54 = vpack.i.bf16 %v750_v11, %v749_v34  ;;  %vm2279_vm3 = vmand %vm699_vm15, %vm708_vm5 }
 0x146   :  { %vm2285_vm13 = vmand %vm700_vm9, %vm709_vm0  ;;  %vm2697_vm9 = vcmask 637952  }
 0x147   :  { %1479 = vrot.lane.b32.xlu2 %v1478_v54, %s1637_s27  ;;  %vm2698_vm0 = vmmov %vm2697_vm9 }
 0x14a   :  { %v2191_v57 = vpop.f32.mrf.mxu0 }
 0x14b   :  { %v720_v61 = vmax.f32 %v2191_v57, 0.0  ;;  %v2198_v1 = vpop.f32.mrf.mxu1 }
 0x14c   :  { %v721_v59 = vmax.f32 %v2198_v1, 0.0 }
 0x14d   :  { %v747_v24 = vsel %vm2193_vm10, %v720_v61, 0.0 }
 0x14e   :  { %v748_v31 = vsel %vm2200_vm11, %v721_v59, 0.0  ;;  %v2215_v49 = vpack.i.bf16 %v747_v24, %v750_v11 }
 0x14f   :  { %v2218_v9 = vpack.i.bf16 %v749_v34, %v748_v31  ;;  %v1473_v10 = vpack.i.bf16 %v748_v31, %v747_v24  ;;  %v604_v31 = vsub.f32 %v561_v46, %v595_v35 }
 0x150   :  { %1489 = vrot.lane.b32.xlu2 %v2215_v49, %s1639_s0 }
 0x151   :  { %1494 = vrot.lane.b32.xlu0 %v2218_v9, %s1641_s12  ;;  %1474 = vrot.lane.b32.xlu1 %v1473_v10, %s1637_s27  ;;  %v620_v10 = vmul.f32 %v2156_v52, %v604_v31 }
 0x153   :  { %v629_v40 = vfloor.f32 %v620_v10 }
 0x155   :  { %vm665_vm1 = vcmp.ge.f32.partialorder %v629_v40, 1.0  ;;  %vm674_vm2 = vcmp.le.f32.partialorder %v629_v40, 16.0 }
 0x156   :  { %vm683_vm6 = vmand %vm665_vm1, %vm674_vm2  ;;  %vm2700_vm2 = vcmask 646144  }
 0x157   :  { %vm2699_vm1 = vmmov %vm2698_vm0 }
 0x158   :  { %1504 = vrot.lane.b32.xlu2 %v2218_v9, %s1642_s13 }
 0x159   :  { %1509 = vrot.lane.b32.xlu0 %v2215_v49, %s1642_s13  ;;  %1484 = vrot.lane.b32.xlu1 %v2218_v9, %s1639_s0 }
 0x160   :  { %1519 = vrot.lane.b32.xlu2 %v2215_v49, %s1643_s14 }
 0x161   :  { %1539 = vrot.lane.b32.xlu0 %v2215_v49, %s1640_s11  ;;  %1499 = vrot.lane.b32.xlu1 %v2215_v49, %s1641_s12 }
 0x166   :  { %v2275_v53 = vpop.f32.mrf.mxu2  ;;  %v2277_v17 = vpop.f32.mrf.mxu3 }
 0x167   :  { %v726_v23 = vmax.f32 %v2275_v53, 0.0  ;;  %v727_v47 = vmax.f32 %v2277_v17, 0.0  ;;  %v1040_v17 = vld [vmem:[%s2647_s1 + $0x10] sm:$0xff] }
 0x168   :  { %1529 = vrot.lane.b32.xlu2 %v2215_v49, %s1644_s15  ;;  %v2243_v42 = vpop.f32.mrf.mxu1  ;;  %v2253_v0 = vpop.f32.mrf.mxu0 }
 0x169   :  { %1544 = vrot.lane.b32.xlu0 %v2218_v9, %s1638_s10  ;;  %1514 = vrot.lane.b32.xlu1 %v2218_v9, %s1643_s14  ;;  %v725_v34 = vmax.f32 %v2243_v42, 0.0  ;;  %v724_v33 = vmax.f32 %v2253_v0, 0.0  ;;  %v753_v36 = vsel %vm2279_vm3, %v726_v23, 0.0 }
 0x16b   :  { %v752_v54 = vsel %vm2245_vm4, %v725_v34, 0.0  ;;  %v751_v60 = vsel %vm2255_vm8, %v724_v33, 0.0 }
 0x16c   :  { %v1553_v51 = vpack.i.bf16 %v752_v54, %v751_v60 }
 0x170   :  { %1534 = vrot.lane.b32.xlu2 %v2218_v9, %s1640_s11 }
 0x171   :  { %1524 = vrot.lane.b32.xlu1 %v2218_v9, %s1644_s15  ;;  %1554 = vrot.lane.b32.xlu0 %v1553_v51, %s1637_s27  ;;  %v754_v9 = vsel %vm2285_vm13, %v727_v47, 0.0 }
 0x172   :  { %v1598_v58 = vpack.i.bf16 %v754_v9, %v753_v36 }
 0x178   :  { %1574 = vrot.lane.b32.xlu2 %v1553_v51, %s1643_s14 }
 0x179   :  { %1549 = vrot.lane.b32.xlu1 %v2215_v49, %s1638_s10  ;;  %1559 = vrot.lane.b32.xlu0 %v1553_v51, %s1639_s0  ;;  %v638_v49 = vmul.f32 24.0, %v629_v40 }
 0x17a   :  { %v531_v52 = vpop.f32.mrf.mxu0 }
 0x17b   :  { %v647_v6 = vsub.f32 %v604_v31, %v638_v49  ;;  %v728_v56 = vmax.f32 %v531_v52, 0.0 }
 0x17d   :  { %v1246_v18 = vadd.f32 -0.5, %v647_v6 }
 0x17f   :  { %vm692_vm7 = vcmp.ge.f32.partialorder %v1246_v18, 1.0  ;;  %vm710_vm15 = vcmp.le.f32.partialorder %v1246_v18, 16.0 }
 0x180   :  { %1599 = vrot.lane.b32.xlu2 %v1598_v58, %s1641_s12  ;;  %vm701_vm14 = vmand %vm683_vm6, %vm692_vm7  ;;  %vm2701_vm6 = vcmask 654336  }
 0x181   :  { %1569 = vrot.lane.b32.xlu1 %v1553_v51, %s1642_s13  ;;  %1564 = vrot.lane.b32.xlu0 %v1553_v51, %s1641_s12  ;;  %vm719_vm5 = vmand %vm701_vm14, %vm710_vm15 }
 0x182   :  { %v755_v25 = vsel %vm719_vm5, %v728_v56, 0.0  ;;  %vm2702_vm7 = vmmov %vm2700_vm2 }
 0x183   :  { %vm2703_vm14 = vmmov %vm2700_vm2 }
 0x184   :  { %vm2704_vm15 = vmmov %vm2701_vm6 }
 0x185   :  { %vm2705_vm5 = vmmov %vm2701_vm6 }
 0x188   :  { %1609 = vrot.lane.b32.xlu2 %v1598_v58, %s1643_s14 }
 0x189   :  { %1579 = vrot.lane.b32.xlu1 %v1553_v51, %s1644_s15  ;;  %1604 = vrot.lane.b32.xlu0 %v1598_v58, %s1642_s13 }
 0x190   :  { %1614 = vrot.lane.b32.xlu2 %v1598_v58, %s1644_s15 }
 0x191   :  { %1584 = vrot.lane.b32.xlu1 %v1553_v51, %s1640_s11  ;;  %1629 = vrot.lane.b32.xlu0 %v1598_v58, %s1637_s27 }
 0x198   :  { %1619 = vrot.lane.b32.xlu2 %v1598_v58, %s1640_s11 }
 0x199   :  { %1589 = vrot.lane.b32.xlu1 %v1553_v51, %s1638_s10  ;;  %1019 = vrot.lane.b32.xlu0 %v755_v25, %s1639_s0 }
 0x1a0   :  { %917 = vrot.lane.b32.xlu2 %v755_v25, %s1643_s14 }
 0x1a1   :  { %1594 = vrot.lane.b32.xlu1 %v1598_v58, %s1639_s0  ;;  %985 = vrot.lane.b32.xlu0 %v755_v25, %s1641_s12  ;;  %v2320_v37 = vpop.permute.xlu2 %1479 }
 0x1a8   :  { %849 = vrot.lane.b32.xlu2 %v755_v25, %s1640_s11 }
 0x1a9   :  { %1624 = vrot.lane.b32.xlu1 %v1598_v58, %s1638_s10  ;;  %951 = vrot.lane.b32.xlu0 %v755_v25, %s1642_s13 }
 0x1aa   :  { %v2324_v2 = vpop.permute.xlu2 %1489 }
 0x1ab   :  { %v1492_v15 = vunpack.i.h.bf16 %v2324_v2  ;;  %v1491_v12 = vunpack.i.l.bf16 %v2324_v2 }
 0x1b1   :  { %883 = vrot.lane.b32.xlu1 %v755_v25, %s1644_s15  ;;  %815 = vrot.lane.b32.xlu0 %v755_v25, %s1638_s10 }
 0x1b2   :  { %v1505_v43 = vpop.permute.xlu2 %1504 }
 0x1b3   :  { %v1507_v27 = vunpack.i.h.bf16 %v1505_v43  ;;  %v1506_v3 = vunpack.i.l.bf16 %v1505_v43 }
 0x1b5   :  { %v954_v30 = vsel %vm2701_vm6, %v1506_v3, %v1507_v27 }
 0x1b9   :  { %781 = vrot.lane.b32.xlu1 %v755_v25, %s1637_s27 }
 0x1ba   :  { %v2329_v7 = vpop.permute.xlu2 %1519 }
 0x1bb   :  { %v1522_v49 = vunpack.i.h.bf16 %v2329_v7  ;;  %v1521_v6 = vunpack.i.l.bf16 %v2329_v7 }
 0x1c2   :  { %v2346_v60 = vpop.permute.xlu2 %1529 }
 0x1c3   :  { %v1495_v4 = vpop.permute.xlu0 %1494  ;;  %v2327_v20 = vpop.permute.xlu1 %1474 }
 0x1c4   :  { %v1497_v16 = vunpack.i.h.bf16 %v1495_v4  ;;  %v1496_v29 = vunpack.i.l.bf16 %v1495_v4 }
 0x1c6   :  { %v988_v55 = vsel %vm2700_vm2, %v1496_v29, %v1497_v16  ;;  %vm2709_vm2 = vcmask 842752  }
 0x1c7   :  { %vm2710_vm6 = vmmov %vm2709_vm2 }
 0x1ca   :  { %v1535_v56 = vpop.permute.xlu2 %1534 }
 0x1cb   :  { %v2333_v28 = vpop.permute.xlu0 %1509  ;;  %v1485_v41 = vpop.permute.xlu1 %1484 }
 0x1cc   :  { %v1487_v39 = vunpack.i.h.bf16 %v1485_v41  ;;  %v1486_v62 = vunpack.i.l.bf16 %v1485_v41  ;;  %v1512_v45 = vunpack.i.h.bf16 %v2333_v28  ;;  %v1511_v51 = vunpack.i.l.bf16 %v2333_v28 }
 0x1cd   :  { %v1531_v41 = vunpack.i.l.bf16 %v2346_v60 }
 0x1ce   :  { %v1021_v14 = vsel %vm2697_vm9, %v1492_v15, %v1486_v62  ;;  %v1022_v46 = vsel %vm2698_vm0, %v1486_v62, %v1487_v39  ;;  %v1023_v22 = vsel %vm2699_vm1, %v1487_v39, %v1491_v12  ;;  %v953_v9 = vsel %vm2704_vm15, %v1512_v45, %v1506_v3 }
 0x1cf   :  { %1056 = vmatpush.msra.mxu1 %v1021_v14  ;;  %1076 = vmatpush.msra.mxu2 %v1022_v46  ;;  %v955_v10 = vsel %vm2705_vm5, %v1507_v27, %v1511_v51  ;;  %vm2706_vm9 = vcmask 834560   ;;  %v1532_v15 = vunpack.i.h.bf16 %v2346_v60  ;;  %v1536_v62 = vunpack.i.l.bf16 %v1535_v56 }
 0x1d0   :  { %1096 = vmatpush.msra.mxu3 %v1023_v22  ;;  %vm2707_vm0 = vmmov %vm2706_vm9 }
 0x1d1   :  { %1077 = vmatpush.msra.mxu2 %v988_v55  ;;  %vm2708_vm1 = vmmov %vm2707_vm0 }
 0x1d3   :  { %v2342_v54 = vpop.permute.xlu0 %1539  ;;  %v2344_v44 = vpop.permute.xlu1 %1499  ;;  %1078 = vmatpush.msra.mxu2 %v954_v30 }
 0x1d4   :  { %v1502_v19 = vunpack.i.h.bf16 %v2344_v44  ;;  %v1501_v35 = vunpack.i.l.bf16 %v2344_v44  ;;  %v1542_v27 = vunpack.i.h.bf16 %v2342_v54  ;;  %v1541_v46 = vunpack.i.l.bf16 %v2342_v54 }
 0x1d6   :  { %v987_v31 = vsel %vm2702_vm7, %v1502_v19, %v1496_v29  ;;  %v989_v36 = vsel %vm2703_vm14, %v1497_v16, %v1501_v35  ;;  %v1537_v16 = vunpack.i.h.bf16 %v1535_v56  ;;  %vm2711_vm7 = vmmov %vm2709_vm2  ;;  %vm2712_vm14 = vcmask 850944  }
 0x1d7   :  { %1057 = vmatpush.msra.mxu1 %v987_v31  ;;  %1097 = vmatpush.msra.mxu3 %v989_v36  ;;  %v1477_v31 = vunpack.i.h.bf16 %v2327_v20  ;;  %v2379_v36 = vpop.permute.xlu2 %1574  ;;  %vm2713_vm15 = vmmov %vm2712_vm14 }
 0x1d8   :  { %vm2714_vm5 = vmmov %vm2712_vm14 }
 0x1d9   :  { %1058 = vmatpush.msra.mxu1 %v953_v9  ;;  %1098 = vmatpush.msra.mxu3 %v955_v10  ;;  %v851_v9 = vsel %vm2712_vm14, %v1542_v27, %v1536_v62  ;;  %v852_v10 = vsel %vm2713_vm15, %v1536_v62, %v1537_v16  ;;  %vm2725_vm15 = vcmask 654336  }
 0x1db   :  { %v1545_v58 = vpop.permute.xlu0 %1544  ;;  %v1515_v40 = vpop.permute.xlu1 %1514 }
 0x1dc   :  { %v1517_v18 = vunpack.i.h.bf16 %v1515_v40  ;;  %v1516_v52 = vunpack.i.l.bf16 %v1515_v40  ;;  %v1547_v22 = vunpack.i.h.bf16 %v1545_v58  ;;  %v1546_v55 = vunpack.i.l.bf16 %v1545_v58 }
 0x1dd   :  { %v853_v58 = vsel %vm2714_vm5, %v1537_v16, %v1541_v46  ;;  %v1481_v40 = vunpack.i.l.bf16 %v2320_v37  ;;  %v1482_v16 = vunpack.i.h.bf16 %v2320_v37  ;;  %vm2726_vm5 = vmmov %vm2725_vm15 }
 0x1de   :  { %v919_v25 = vsel %vm2706_vm9, %v1522_v49, %v1516_v52  ;;  %v920_v43 = vsel %vm2707_vm0, %v1516_v52, %v1517_v18  ;;  %v921_v4 = vsel %vm2708_vm1, %v1517_v18, %v1521_v6  ;;  %vm2715_vm9 = vcmask 1031168  }
 0x1df   :  { %1059 = vmatpush.msra.mxu1 %v919_v25  ;;  %1079 = vmatpush.msra.mxu2 %v920_v43  ;;  %v818_v49 = vsel %vm2715_vm9, %v1546_v55, %v1547_v22  ;;  %v1476_v18 = vunpack.i.l.bf16 %v2327_v20  ;;  %vm2716_vm0 = vcmask 1039360   ;;  %vm2717_vm1 = vmmov %vm2715_vm9  ;;  %v2414_v2 = vpop.permute.xlu2 %1599  ;;  %vm2727_vm9 = vcmask 834560  }
 0x1e0   :  { %1099 = vmatpush.msra.mxu3 %v921_v4  ;;  %vm2721_vm14 = vmmov %vm2716_vm0 }
 0x1e3   :  { %v1525_v29 = vpop.permute.xlu1 %1524  ;;  %v2369_v39 = vpop.permute.xlu0 %1554 }
 0x1e4   :  { %v1527_v3 = vunpack.i.h.bf16 %v1525_v29  ;;  %v1526_v14 = vunpack.i.l.bf16 %v1525_v29 }
 0x1e6   :  { %v885_v30 = vsel %vm2709_vm2, %v1532_v15, %v1526_v14  ;;  %v886_v45 = vsel %vm2710_vm6, %v1526_v14, %v1527_v3  ;;  %v887_v19 = vsel %vm2711_vm7, %v1527_v3, %v1531_v41  ;;  %v784_v15 = vsel %vm2716_vm0, %v1477_v31, %v1481_v40  ;;  %vm2718_vm2 = vmmov %vm2717_vm1 }
 0x1e7   :  { %1060 = vmatpush.msra.mxu1 %v885_v30  ;;  %1080 = vmatpush.msra.mxu2 %v886_v45  ;;  %vm2719_vm6 = vcmask 637952   ;;  %vm2720_vm7 = vmmov %vm2716_vm0  ;;  %v785_v14 = vsel %vm2721_vm14, %v1481_v40, %v1482_v16  ;;  %v2459_v28 = vpop.permute.xlu2 %1609 }
 0x1e8   :  { %1100 = vmatpush.msra.mxu3 %v887_v19  ;;  %v783_v3 = vsel %vm2720_vm7, %v1476_v18, %v1477_v31  ;;  %vm2728_vm0 = vmmov %vm2727_vm9 }
 0x1e9   :  { %1061 = vmatpush.msra.mxu1 %v851_v9  ;;  %1081 = vmatpush.msra.mxu2 %v852_v10  ;;  %v2472_v9 = vld [vmem:[%s2646_s3] sm:$0xff] }
 0x1ea   :  { %1101 = vmatpush.msra.mxu3 %v853_v58 }
 0x1eb   :  { %v2389_v52 = vpop.permute.xlu1 %1549  ;;  %1082 = vmatpush.msra.mxu2 %v818_v49  ;;  %v2391_v56 = vpop.permute.xlu0 %1559 }
 0x1ec   :  { %v1552_v25 = vunpack.i.h.bf16 %v2389_v52  ;;  %v1551_v43 = vunpack.i.l.bf16 %v2389_v52  ;;  %v1561_v4 = vunpack.i.l.bf16 %v2391_v56  ;;  %v1562_v27 = vunpack.i.h.bf16 %v2391_v56 }
 0x1ed   :  { %1083 = vmatpush.msra.mxu2 %v784_v15  ;;  %v1557_v15 = vunpack.i.h.bf16 %v2369_v39 }
 0x1ee   :  { %v817_v29 = vsel %vm2717_vm1, %v1552_v25, %v1546_v55  ;;  %v819_v20 = vsel %vm2718_vm2, %v1547_v22, %v1551_v43  ;;  %v1024_v62 = vsel %vm2719_vm6, %v1491_v12, %v1561_v4  ;;  %v1577_v22 = vunpack.i.h.bf16 %v2379_v36 }
 0x1ef   :  { %1062 = vmatpush.msra.mxu1 %v817_v29  ;;  %1249 = vmatpush.msk.msra.mxu2 %vm2200_vm11, %v721_v59  ;;  %vm2722_vm11 = vmmov %vm2719_vm6  ;;  %v1576_v55 = vunpack.i.l.bf16 %v2379_v36  ;;  %vm2729_vm1 = vcmask 842752   ;;  %vm2731_vm6 = vcmask 588800   ;;  %v2486_v40 = vpop.permute.xlu2 %1614  ;;  %v1556_v29 = vunpack.i.l.bf16 %v2369_v39 }
 0x1f0   :  { %1102 = vmatpush.msra.mxu3 %v819_v20  ;;  %1116 = vmatpush.msrb.mxu0 %v1024_v62  ;;  %v1025_v59 = vsel %vm2722_vm11, %v1561_v4, %v1562_v27  ;;  %vm2730_vm2 = vmmov %vm2729_vm1  ;;  %vm2734_vm11 = vcmask 850944  }
 0x1f1   :  { %1063 = vmatpush.msra.mxu1 %v783_v3  ;;  %v922_v44 = vsel %vm2727_vm9, %v1521_v6, %v1576_v55  ;;  %1250 = vmatmul.msk.f32.vlgmr.msra.gmra.mxu2 %vm2731_vm6, %v2472_v9  ;;  %vm2732_vm7 = vmmov %vm2731_vm6 }
 0x1f2   :  { %1103 = vmatpush.msra.mxu3 %v785_v14  ;;  %vm2733_vm14 = vmmov %vm2731_vm6 }
 0x1f3   :  { %1247 = vmatpush.msk.msra.mxu1 %vm2193_vm10, %v720_v61  ;;  %v2420_v1 = vpop.permute.xlu1 %1569  ;;  %v2422_v8 = vpop.permute.xlu0 %1564  ;;  %vm2723_vm10 = vcmask 646144  }
 0x1f4   :  { %1251 = vmatpush.msk.msra.mxu3 %vm2174_vm12, %v722_v50  ;;  %v1572_v12 = vunpack.i.h.bf16 %v2420_v1  ;;  %v1571_v57 = vunpack.i.l.bf16 %v2420_v1  ;;  %v1567_v32 = vunpack.i.h.bf16 %v2422_v8  ;;  %v1566_v61 = vunpack.i.l.bf16 %v2422_v8  ;;  %vm2724_vm12 = vmmov %vm2723_vm10  ;;  %1248 = vmatmul.msk.f32.vlgmr.msra.gmra.mxu1 %vm2733_vm14, %v2472_v9 }
 0x1f5   :  { %1136 = vmatpush.msrb.mxu1 %v1025_v59  ;;  %1252 = vmatmul.msk.f32.vlgmr.msra.gmra.mxu3 %vm2732_vm7, %v2472_v9  ;;  %vm2746_vm14 = vcmask 646144  }
 0x1f6   :  { %v990_v13 = vsel %vm2723_vm10, %v1501_v35, %v1566_v61  ;;  %v991_v38 = vsel %vm2724_vm12, %v1566_v61, %v1567_v32  ;;  %v956_v50 = vsel %vm2725_vm15, %v1511_v51, %v1571_v57  ;;  %v957_v30 = vsel %vm2726_vm5, %v1571_v57, %v1572_v12  ;;  %vm2735_vm10 = vmmov %vm2734_vm11 }
 0x1f7   :  { %1117 = vmatpush.msrb.mxu0 %v990_v13  ;;  %1137 = vmatpush.msrb.mxu1 %v991_v38  ;;  %v923_v35 = vsel %vm2728_vm0, %v1576_v55, %v1577_v22  ;;  %vm2736_vm12 = vcmask 1031168   ;;  %v2506_v3 = vpop.permute.xlu2 %1619  ;;  %vm2738_vm5 = vcmask 1039360   ;;  %vm2740_vm0 = vnez %v2682_v26 }
 0x1f8   :  { %vm2737_vm15 = vmmov %vm2736_vm12  ;;  %v786_v14 = vsel %vm2738_vm5, %v1482_v16, %v1556_v29  ;;  %v1601_v16 = vunpack.i.l.bf16 %v2414_v2  ;;  %v1616_v38 = vunpack.i.l.bf16 %v2486_v40 }
 0x1f9   :  { %1118 = vmatpush.msrb.mxu0 %v956_v50  ;;  %1138 = vmatpush.msrb.mxu1 %v957_v30  ;;  %vm2739_vm9 = vmmov %vm2738_vm5  ;;  %vm2751_vm5 = vcmask 834560  }
 0x1fa   :  { %v787_v59 = vsel %vm2739_vm9, %v1556_v29, %v1557_v15  ;;  %v992_v55 = vsel %vm2746_vm14, %v1567_v32, %v1601_v16  ;;  %vm2752_vm9 = vmmov %vm2751_vm5 }
 0x1fb   :  { %v2455_v45 = vpop.permute.xlu1 %1579  ;;  %v2457_v19 = vpop.permute.xlu0 %1604  ;;  %1119 = vmatpush.msrb.mxu0 %v922_v44  ;;  %1139 = vmatpush.msrb.mxu1 %v923_v35 }
 0x1fc   :  { %v1582_v51 = vunpack.i.h.bf16 %v2455_v45  ;;  %v1581_v31 = vunpack.i.l.bf16 %v2455_v45  ;;  %v1607_v21 = vunpack.i.h.bf16 %v2457_v19  ;;  %v1606_v26 = vunpack.i.l.bf16 %v2457_v19 }
 0x1fd   :  { %v1622_v19 = vunpack.i.h.bf16 %v2506_v3 }
 0x1fe   :  { %v888_v7 = vsel %vm2729_vm1, %v1531_v41, %v1581_v31  ;;  %v889_v6 = vsel %vm2730_vm2, %v1581_v31, %v1582_v51  ;;  %vm2741_vm1 = vmmov %vm2731_vm6 }
 0x1ff   :  { %1120 = vmatpush.msrb.mxu0 %v888_v7  ;;  %1140 = vmatpush.msrb.mxu1 %v889_v6  ;;  %vm2742_vm2 = vmmov %vm2741_vm1  ;;  %v918_v50 = vpop.permute.xlu2 %917 }
 0x203   :  { %v2478_v60 = vpop.permute.xlu1 %1584  ;;  %v2480_v41 = vpop.permute.xlu0 %1629 }
 0x204   :  { %v1587_v10 = vunpack.i.h.bf16 %v2478_v60  ;;  %v1586_v58 = vunpack.i.l.bf16 %v2478_v60 }
 0x206   :  { %v854_v49 = vsel %vm2734_vm11, %v1541_v46, %v1586_v58  ;;  %v855_v18 = vsel %vm2735_vm10, %v1586_v58, %v1587_v10  ;;  %vm2747_vm11 = vmmov %vm2746_vm14  ;;  %v1632_v58 = vunpack.i.h.bf16 %v2480_v41  ;;  %vm2759_vm14 = vcmask 1031168  }
 0x207   :  { %1121 = vmatpush.msrb.mxu0 %v854_v49  ;;  %1141 = vmatpush.msrb.mxu1 %v855_v18  ;;  %vm2748_vm10 = vmmov %vm2747_vm11  ;;  %v850_v29 = vpop.permute.xlu2 %849 }
 0x20b   :  { %v2494_v25 = vpop.permute.xlu1 %1589  ;;  %v1020_v4 = vpop.permute.xlu0 %1019 }
 0x20c   :  { %v1592_v20 = vunpack.i.h.bf16 %v2494_v25  ;;  %v1591_v62 = vunpack.i.l.bf16 %v2494_v25 }
 0x20e   :  { %v820_v54 = vsel %vm2736_vm12, %v1551_v43, %v1591_v62  ;;  %v821_v46 = vsel %vm2737_vm15, %v1591_v62, %v1592_v20  ;;  %v1602_v43 = vunpack.i.h.bf16 %v2414_v2  ;;  %v1612_v2 = vunpack.i.h.bf16 %v2459_v28 }
 0x20f   :  { %1122 = vmatpush.msrb.mxu0 %v820_v54  ;;  %1142 = vmatpush.msrb.mxu1 %v821_v46  ;;  %vm2749_vm12 = vcmask 654336  }
 0x210   :  { %v993_v13 = vsel %vm2747_vm11, %v1601_v16, %v1602_v43  ;;  %v958_v30 = vsel %vm2749_vm12, %v1572_v12, %v1606_v26  ;;  %vm2750_vm15 = vmmov %vm2749_vm12 }
 0x211   :  { %1123 = vmatpush.msrb.mxu0 %v786_v14  ;;  %1143 = vmatpush.msrb.mxu1 %v787_v59  ;;  %v959_v8 = vsel %vm2750_vm15, %v1606_v26, %v1607_v21  ;;  %vm2760_vm11 = vmmov %vm2759_vm14  ;;  %v1042_v14 = vld [vmem:[%s2647_s1 + $0x20] sm:$0xff] }
 0x213   :  { %v1595_v52 = vpop.permute.xlu1 %1594  ;;  %1253 = vmatpush.msk.msrb.mxu0 %vm2740_vm0, %v723_v48  ;;  %1255 = vmatpush.msk.msrb.mxu1 %vm2255_vm8, %v724_v33  ;;  %v986_v37 = vpop.permute.xlu0 %985  ;;  %vm2743_vm8 = vcmask 637952   ;;  %v1611_v33 = vunpack.i.l.bf16 %v2459_v28  ;;  %v1621_v28 = vunpack.i.l.bf16 %v2506_v3  ;;  %vm2753_vm0 = vmmov %vm2749_vm12  ;;  %v1041_v3 = vld [vmem:[%s2647_s1 + $0x18] sm:$0xff] }
 0x214   :  { %v1597_v57 = vunpack.i.h.bf16 %v1595_v52  ;;  %v1596_v61 = vunpack.i.l.bf16 %v1595_v52  ;;  %1254 = vmatmul.msk.f32.vlgmr.msrb.gmra.mxu0 %vm2741_vm1, %v2472_v9  ;;  %1256 = vmatmul.msk.f32.vlgmr.msrb.gmra.mxu1 %vm2742_vm2, %v2472_v9  ;;  %vm2744_vm6 = vmmov %vm2743_vm8  ;;  %v994_v56 = vsel %vm2748_vm10, %v1602_v43, %v986_v37  ;;  %vm2754_vm1 = vcmask 842752  }
 0x215   :  { %vm2745_vm7 = vmmov %vm2744_vm6  ;;  %v924_v35 = vsel %vm2751_vm5, %v1577_v22, %v1611_v33  ;;  %v925_v31 = vsel %vm2752_vm9, %v1611_v33, %v1612_v2  ;;  %v890_v6 = vsel %vm2754_vm1, %v1582_v51, %v1616_v38  ;;  %vm2761_vm10 = vcmask 1039360  }
 0x216   :  { %v1026_v48 = vsel %vm2743_vm8, %v1562_v27, %v1596_v61  ;;  %v1027_v0 = vsel %vm2744_vm6, %v1596_v61, %v1597_v57  ;;  %v1028_v11 = vsel %vm2745_vm7, %v1597_v57, %v1020_v4  ;;  %v1617_v27 = vunpack.i.h.bf16 %v2486_v40  ;;  %vm2755_vm2 = vmmov %vm2754_vm1  ;;  %v1043_v61 = vld [vmem:[%s2647_s1 + $0x28] sm:$0xff] }
 0x217   :  { %1156 = vmatpush.msrb.mxu2 %v1026_v48  ;;  %1176 = vmatpush.msrb.mxu3 %v1027_v0  ;;  %vm2756_vm8 = vmmov %vm2751_vm5  ;;  %v1631_v40 = vunpack.i.l.bf16 %v2480_v41  ;;  %vm2757_vm6 = vcmask 850944   ;;  %vm2765_vm9 = vcmask 588800   ;;  %v1045_v48 = vld [vmem:[%s2647_s1 + $0x38] sm:$0xff] }
 0x218   :  { %1196 = vmatpush.msra.mxu0 %v1028_v11  ;;  %v891_v36 = vsel %vm2755_vm2, %v1616_v38, %v1617_v27  ;;  %v926_v22 = vsel %vm2756_vm8, %v1612_v2, %v918_v50  ;;  %v856_v49 = vsel %vm2757_vm6, %v1587_v10, %v1621_v28  ;;  %vm2758_vm7 = vmmov %vm2757_vm6 }
 0x219   :  { %1157 = vmatpush.msrb.mxu2 %v992_v55  ;;  %1177 = vmatpush.msrb.mxu3 %v993_v13  ;;  %v857_v18 = vsel %vm2758_vm7, %v1621_v28, %v1622_v19  ;;  %v788_v60 = vsel %vm2761_vm10, %v1557_v15, %v1631_v40  ;;  %vm2762_vm12 = vmmov %vm2761_vm10  ;;  %v1039_v15 = vld [vmem:[%s2647_s1 + $0x8] sm:$0xff] }
 0x21a   :  { %1197 = vmatpush.msra.mxu0 %v994_v56  ;;  %v789_v41 = vsel %vm2762_vm12, %v1631_v40, %v1632_v58  ;;  %vm2763_vm15 = vmmov %vm2754_vm1 }
 0x21b   :  { %v1625_v44 = vpop.permute.xlu1 %1624  ;;  %1158 = vmatpush.msrb.mxu2 %v958_v30  ;;  %1178 = vmatpush.msrb.mxu3 %v959_v8  ;;  %v952_v32 = vpop.permute.xlu0 %951  ;;  %vm2764_vm5 = vmmov %vm2757_vm6 }
 0x21c   :  { %v960_v1 = vsel %vm2753_vm0, %v1607_v21, %v952_v32  ;;  %v1627_v12 = vunpack.i.h.bf16 %v1625_v44  ;;  %v1626_v7 = vunpack.i.l.bf16 %v1625_v44  ;;  %v858_v39 = vsel %vm2764_vm5, %v1622_v19, %v850_v29  ;;  %vm2766_vm0 = vmmov %vm2760_vm11  ;;  %v1044_v21 = vld [vmem:[%s2647_s1 + $0x30] sm:$0xff] }
 0x21d   :  { %1159 = vmatpush.msrb.mxu2 %v924_v35  ;;  %1179 = vmatpush.msrb.mxu3 %v925_v31  ;;  %vm2767_vm1 = vmmov %vm2765_vm9 }
 0x21e   :  { %1198 = vmatpush.msra.mxu0 %v960_v1  ;;  %v822_v45 = vsel %vm2759_vm14, %v1592_v20, %v1626_v7  ;;  %v823_v51 = vsel %vm2760_vm11, %v1626_v7, %v1627_v12  ;;  %vm2768_vm2 = vmmov %vm2761_vm10 }
 0x21f   :  { %1160 = vmatpush.msrb.mxu2 %v890_v6  ;;  %1180 = vmatpush.msrb.mxu3 %v891_v36 }
 0x220   :  { %1199 = vmatpush.msra.mxu0 %v926_v22 }
 0x221   :  { %1161 = vmatpush.msrb.mxu2 %v856_v49  ;;  %1181 = vmatpush.msrb.mxu3 %v857_v18 }
 0x223   :  { %1162 = vmatpush.msrb.mxu2 %v822_v45  ;;  %1182 = vmatpush.msrb.mxu3 %v823_v51  ;;  %v884_v4 = vpop.permute.xlu1 %883  ;;  %v816_v62 = vpop.permute.xlu0 %815 }
 0x224   :  { %v892_v10 = vsel %vm2763_vm15, %v1617_v27, %v884_v4  ;;  %v824_v25 = vsel %vm2766_vm0, %v1627_v12, %v816_v62 }
 0x225   :  { %1163 = vmatpush.msrb.mxu2 %v788_v60  ;;  %1183 = vmatpush.msrb.mxu3 %v789_v41 }
 0x226   :  { %1200 = vmatpush.msra.mxu0 %v892_v10 }
 0x227   :  { %1257 = vmatpush.msk.msrb.mxu2 %vm2245_vm4, %v725_v34  ;;  %1259 = vmatpush.msk.msrb.mxu3 %vm2279_vm3, %v726_v23  ;;  %vm2769_vm4 = vmmov %vm2767_vm1  ;;  %v1038_v34 = vld [vmem:[%s2647_s1] sm:$0xff] }
 0x228   :  { %1201 = vmatpush.msra.mxu0 %v858_v39  ;;  %1258 = vmatmul.msk.f32.vlgmr.msrb.gmra.mxu2 %vm2765_vm9, %v2472_v9 }
 0x229   :  { %1260 = vmatmul.msk.f32.vlgmr.msrb.gmra.mxu3 %vm2767_vm1, %v2472_v9 }
 0x22a   :  { %1202 = vmatpush.msra.mxu0 %v824_v25 }
 0x22b   :  { %v782_v42 = vpop.permute.xlu1 %781 }
 0x22c   :  { %v790_v63 = vsel %vm2768_vm2, %v1632_v58, %v782_v42 }
 0x22d   :  { %1203 = vmatpush.msra.mxu0 %v790_v63 }
 0x22f   :  { %1261 = vmatpush.msk.msra.mxu0 %vm2285_vm13, %v727_v47 }
 0x230   :  { %1262 = vmatmul.msk.f32.vlgmr.msra.gmra.mxu0 %vm2769_vm4, %v2472_v9 }
 0x271   :  { %v1066_v53 = vpop.f32.mrf.mxu1 }
 0x272   :  { %v1067_v24 = vadd.f32 %v1066_v53, %v1038_v34 }
 0x274   :  { %v1209_v23 = vmax.f32 %v1067_v24, 0.0  ;;  %v1086_v47 = vpop.f32.mrf.mxu2 }
 0x275   :  { %v1087_v9 = vadd.f32 %v1086_v47, %v1039_v15 }
 0x276   :  { %1217 = vst [vmem:[%s2648_s4] sm:$0xff] %v1209_v23 }
 0x277   :  { %v1210_v54 = vmax.f32 %v1087_v9, 0.0 }
 0x278   :  { %v1106_v5 = vpop.f32.mrf.mxu3 }
 0x279   :  { %v1107_v20 = vadd.f32 %v1106_v5, %v1040_v17  ;;  %1218 = vst [vmem:[%s2648_s4 + $0x8] sm:$0xff] %v1210_v54 }
 0x27b   :  { %v1211_v46 = vmax.f32 %v1107_v20, 0.0 }
 0x27d   :  { %1219 = vst [vmem:[%s2648_s4 + $0x10] sm:$0xff] %v1211_v46 }
 0x291   :  { %v1126_v59 = vpop.f32.mrf.mxu0  ;;  %v1146_v52 = vpop.f32.mrf.mxu1 }
 0x292   :  { %v1127_v37 = vadd.f32 %v1126_v59, %v1041_v3  ;;  %v1147_v43 = vadd.f32 %v1146_v52, %v1042_v14 }
 0x294   :  { %v1212_v16 = vmax.f32 %v1127_v37, 0.0  ;;  %v1213_v57 = vmax.f32 %v1147_v43, 0.0 }
 0x296   :  { %1220 = vst [vmem:[%s2648_s4 + $0x18] sm:$0xff] %v1212_v16 }
 0x297   :  { %1221 = vst [vmem:[%s2648_s4 + $0x20] sm:$0xff] %v1213_v57 }
 0x2ab   :  { %v1166_v26 = vpop.f32.mrf.mxu2 }
 0x2ac   :  { %v1167_v0 = vadd.f32 %v1166_v26, %v1043_v61  ;;  %v1186_v11 = vpop.f32.mrf.mxu3 }
 0x2ad   :  { %v1187_v33 = vadd.f32 %v1186_v11, %v1044_v21  ;;  %v1206_v2 = vpop.f32.mrf.mxu0 }
 0x2ae   :  { %v1214_v55 = vmax.f32 %v1167_v0, 0.0  ;;  %v1207_v13 = vadd.f32 %v1206_v2, %v1045_v48 }
 0x2af   :  { %v1215_v56 = vmax.f32 %v1187_v33, 0.0 }
 0x2b0   :  { %1222 = vst [vmem:[%s2648_s4 + $0x28] sm:$0xff] %v1214_v55  ;;  %v1216_v27 = vmax.f32 %v1207_v13, 0.0 }
 0x2b1   :  { %1223 = vst [vmem:[%s2648_s4 + $0x30] sm:$0xff] %v1215_v56 }
 0x2b2   :  { %1224 = vst [vmem:[%s2648_s4 + $0x38] sm:$0xff] %v1216_v27 }

</bundles_post_ra>
